<compile_context>
chip_gen: v7x
topology: tpu7x:2x2x1
jax: 0.10.0
libtpu: 0.0.40
codegen_flags: <defaults>
</compile_context>

<pallas_src>
import functools
import math

import jax
import jax.numpy as jnp
from jax.experimental import pallas as pl
from jax.experimental.pallas import tpu as pltpu


LANE = 128  # TPU lane width / MXU column width


def _round_up(x: int, m: int) -> int:
    return (x + m - 1) // m * m


# ----------------------------- fused Pallas kernel ------------------------- #

def _sdae_fused_kernel(*refs, num_layers: int, acts):
    """refs = (x_ref, w0, b0, w1, b1, ..., w{L-1}, b{L-1}, o_ref).

    x_ref: (TM, P0) bf16       w_i: (Pin_i, Pout_i) bf16    b_i: (1, Pout_i) f32
    o_ref: (TM, Pout_last) f32
    All P* are multiples of 128 (lane-padded); padded lanes carry exact zeros.
    """
    x_ref = refs[0]
    o_ref = refs[1 + 2 * num_layers]

    h = x_ref[...]  # stays on-chip for the whole stack
    for li in range(num_layers):  # static unroll of the layer chain
        w_ref = refs[1 + 2 * li]
        b_ref = refs[2 + 2 * li]
        y = jnp.dot(h.astype(w_ref.dtype), w_ref[...],
                    preferred_element_type=jnp.float32)
        y = y + b_ref[...]            # (1, Pout) broadcast, f32
        if acts[li]:
            y = jnp.maximum(y, 0.0)
        # bf16 carry between layers (halves intermediate bytes); keep the last
        # layer's f32 result for the f32 output store.
        h = y if li == num_layers - 1 else y.astype(jnp.bfloat16)
    o_ref[...] = h.astype(o_ref.dtype)


# --------------------------- parameter construction ------------------------ #

def _xavier_uniform(key, out_dim: int, in_dim: int, gain: float) -> jax.Array:
    """Matches torch.nn.init.xavier_uniform_ for a weight of shape (out, in)."""
    bound = gain * math.sqrt(6.0 / (in_dim + out_dim))
    return jax.random.uniform(key, (out_dim, in_dim), jnp.float32,
                              minval=-bound, maxval=bound)


def build_sdae_params(key, dimensions, *, compute_dtype=jnp.bfloat16):
    """Lane-padded, pre-transposed parameters in forward (enc then dec) order.

    Returns (weights, biases, acts, layer_dims):
      weights[i]: (Pin_i, Pout_i) compute_dtype  (zero-padded w.T)
      biases[i]:  (1, Pout_i)     float32        (torch init is 0)
      acts[i]:    bool (ReLU after this layer)
      layer_dims[i]: (din, dout) true (unpadded) dims
    """
    gain = math.sqrt(2.0)  # nn.init.calculate_gain('relu')

    # encoder: D0->D1 R, ..., D(k-2)->D(k-1) R, D(k-1)->Dk (no act)
    enc_dims = list(zip(dimensions[:-1], dimensions[1:]))
    enc_act = [True] * (len(enc_dims) - 1) + [False]
    # decoder: Dk->D(k-1) R, ..., D1->D0 R (final_activation=ReLU)
    rev = list(reversed(dimensions))
    dec_dims = list(zip(rev[:-1], rev[1:]))
    dec_act = [True] * len(dec_dims)

    layer_dims = enc_dims + dec_dims
    acts = tuple(enc_act + dec_act)

    keys = jax.random.split(key, len(layer_dims))
    weights, biases = [], []
    for k, (din, dout) in zip(keys, layer_dims):
        w = _xavier_uniform(k, dout, din, gain)          # torch layout (out, in)
        pin, pout = _round_up(din, LANE), _round_up(dout, LANE)
        w_pad = jnp.zeros((pin, pout), jnp.float32).at[:din, :dout].set(w.T)
        b_pad = jnp.zeros((1, pout), jnp.float32)        # nn.init.constant_(bias, 0)
        weights.append(w_pad.astype(compute_dtype))
        biases.append(b_pad)
    return weights, biases, acts, layer_dims


# --------------------------------- forward --------------------------------- #

def _pick_tm(M: int) -> int:
    """Batch tile: 128-row multiple, <=1024, and >=2 grid steps (v7x 2 TCs)."""
    return max(LANE, min(1024, _round_up(-(-M // 2), LANE)))


def sdae_forward(x, weights, biases, acts, dimensions, *, tm: int | None = None):
    """Fused encoder+decoder forward.  x: (M, D0) -> (M, D0) f32."""
    num_layers = len(weights)
    M, d0 = x.shape
    p0 = weights[0].shape[0]
    p_out = weights[-1].shape[1]
    if tm is None:
        tm = _pick_tm(M)
    m_pad = _round_up(M, tm)

    # Fast path: no host-side pad copy when the batch divides TM and the
    # feature dim is already lane-aligned (the shipped config).
    if m_pad == M and p0 == d0:
        x_op = x
    else:
        x_op = jnp.zeros((m_pad, p0), x.dtype).at[:M, :d0].set(x)

    # For large real-world dims, single-buffer the resident weights/biases
    # (constant index_map -> no re-DMA anyway) to respect v7x's 64 MiB VMEM.
    w_bytes = sum(int(w.size) * w.dtype.itemsize for w in weights)
    b_bytes = sum(int(b.size) * b.dtype.itemsize for b in biases)
    single_buffer_weights = w_bytes > (8 << 20)

    def _resident_spec(shape):
        if single_buffer_weights:
            return pl.BlockSpec(shape, lambda i: (0, 0),
                                pipeline_mode=pl.Buffered(1))
        return pl.BlockSpec(shape, lambda i: (0, 0))

    in_specs = [pl.BlockSpec((tm, p0), lambda i: (i, 0))]       # batch-tiled x
    operands = [x_op]
    for w, b in zip(weights, biases):
        pin, pout = w.shape
        in_specs.append(_resident_spec((pin, pout)))
        in_specs.append(_resident_spec((1, pout)))
        operands += [w, b]

    # Advisory cost estimate so XLA schedules/overlaps around this small kernel.
    flops = 2 * m_pad * sum(w.shape[0] * w.shape[1] for w in weights)
    bytes_accessed = (int(x_op.size) * x_op.dtype.itemsize
                      + w_bytes + b_bytes
                      + m_pad * p_out * 4)
    cost = pl.CostEstimate(flops=flops, transcendentals=0,
                           bytes_accessed=bytes_accessed)

    kernel = functools.partial(_sdae_fused_kernel,
                               num_layers=num_layers, acts=acts)

    out = pl.pallas_call(
        kernel,
        out_shape=jax.ShapeDtypeStruct((m_pad, p_out), jnp.float32),
        grid=(m_pad // tm,),
        in_specs=in_specs,
        out_specs=pl.BlockSpec((tm, p_out), lambda i: (i, 0)),
        compiler_params=pltpu.CompilerParams(
            dimension_semantics=("parallel",),       # shard batch tiles across TCs
            vmem_limit_bytes=32 * 1024 * 1024,       # safe on v5e/v6e/v7x
        ),
        cost_estimate=cost,
    )(*operands)

    if m_pad != M or p_out != dimensions[0]:
        out = out[:M, :dimensions[0]]                # only sliced when ragged/padded
    return out


# ----------------------------------- main ----------------------------------- #

if __name__ == "__main__":
    dimensions = [128, 64, 32, 16]   # embedding_dim=128, hidden_dim=16
    batch = 256                      # -> TM=128, grid=(2,), zero host-side copies

    key = jax.random.PRNGKey(0)
    k_params, k_x = jax.random.split(key)

    weights, biases, acts, layer_dims = build_sdae_params(k_params, dimensions)
    # Feed x as bf16: it would be cast to bf16 before the first matmul anyway,
    # and this halves the dominant input DMA traffic.
    x = jax.random.normal(k_x, (batch, dimensions[0]), jnp.float32).astype(jnp.bfloat16)

    out = sdae_forward(x, weights, biases, acts, dimensions)
    out = jax.block_until_ready(out)

    # Pure-JAX reference with identical numerics (bf16 matmul inputs, f32
    # accumulate + bias + ReLU, bf16 inter-layer carry) using unpadded slices.
    ref = x
    n_layers = len(layer_dims)
    for i, ((din, dout), w_pad, b_pad, act) in enumerate(
            zip(layer_dims, weights, biases, acts)):
        w = w_pad[:din, :dout]
        b = b_pad[0, :dout]
        y = jnp.dot(ref.astype(w.dtype), w,
                    preferred_element_type=jnp.float32) + b
        if act:
            y = jnp.maximum(y, 0.0)
        ref = y if i == n_layers - 1 else y.astype(jnp.bfloat16)
    ref = jax.block_until_ready(ref)

    assert out.shape == (batch, dimensions[0])
    assert out.dtype == jnp.float32
    assert bool(jnp.all(jnp.isfinite(out)))
    assert jnp.allclose(out, ref, atol=1e-2, rtol=1e-2)

    print("KERNEL_OK")
</pallas_src>

<mosaic_0001>
module attributes {stable_mosaic.version = 11 : i64} {
  func.func @_sdae_fused_kernel(%arg0: i32, %arg1: memref<128x128xbf16, #tpu.memory_space<vmem>>, %arg2: memref<128x128xbf16, #tpu.memory_space<vmem>>, %arg3: memref<1x128xf32, #tpu.memory_space<vmem>>, %arg4: memref<128x128xbf16, #tpu.memory_space<vmem>>, %arg5: memref<1x128xf32, #tpu.memory_space<vmem>>, %arg6: memref<128x128xbf16, #tpu.memory_space<vmem>>, %arg7: memref<1x128xf32, #tpu.memory_space<vmem>>, %arg8: memref<128x128xbf16, #tpu.memory_space<vmem>>, %arg9: memref<1x128xf32, #tpu.memory_space<vmem>>, %arg10: memref<128x128xbf16, #tpu.memory_space<vmem>>, %arg11: memref<1x128xf32, #tpu.memory_space<vmem>>, %arg12: memref<128x128xbf16, #tpu.memory_space<vmem>>, %arg13: memref<1x128xf32, #tpu.memory_space<vmem>>, %arg14: memref<128x128xf32, #tpu.memory_space<vmem>>) attributes {dimension_semantics = [#tpu.dimension_semantics<parallel>], iteration_bounds = array<i64: 2>, scalar_prefetch = 0 : i64, scratch_operands = 0 : i64, tpu.core_type = #tpu.core_type<tc>, window_params = [{transform_indices = @transform_0, window_bounds = array<i64: 128, 128>}, {pipeline_mode = #tpu.pipeline_mode<synchronous>, transform_indices = @transform_1, window_bounds = array<i64: 128, 128>}, {pipeline_mode = #tpu.pipeline_mode<synchronous>, transform_indices = @transform_2, window_bounds = array<i64: 1, 128>}, {pipeline_mode = #tpu.pipeline_mode<synchronous>, transform_indices = @transform_3, window_bounds = array<i64: 128, 128>}, {pipeline_mode = #tpu.pipeline_mode<synchronous>, transform_indices = @transform_4, window_bounds = array<i64: 1, 128>}, {pipeline_mode = #tpu.pipeline_mode<synchronous>, transform_indices = @transform_5, window_bounds = array<i64: 128, 128>}, {pipeline_mode = #tpu.pipeline_mode<synchronous>, transform_indices = @transform_6, window_bounds = array<i64: 1, 128>}, {pipeline_mode = #tpu.pipeline_mode<synchronous>, transform_indices = @transform_7, window_bounds = array<i64: 128, 128>}, {pipeline_mode = #tpu.pipeline_mode<synchronous>, transform_indices = @transform_8, window_bounds = array<i64: 1, 128>}, {pipeline_mode = #tpu.pipeline_mode<synchronous>, transform_indices = @transform_9, window_bounds = array<i64: 128, 128>}, {pipeline_mode = #tpu.pipeline_mode<synchronous>, transform_indices = @transform_10, window_bounds = array<i64: 1, 128>}, {pipeline_mode = #tpu.pipeline_mode<synchronous>, transform_indices = @transform_11, window_bounds = array<i64: 128, 128>}, {pipeline_mode = #tpu.pipeline_mode<synchronous>, transform_indices = @transform_12, window_bounds = array<i64: 1, 128>}, {transform_indices = @transform_13, window_bounds = array<i64: 128, 128>}]} {
    %c0 = arith.constant 0 : index
    %c0_0 = arith.constant 0 : index
    %0 = vector.load %arg1[%c0, %c0_0] : memref<128x128xbf16, #tpu.memory_space<vmem>>, vector<128x128xbf16>
    %c0_1 = arith.constant 0 : index
    %c0_2 = arith.constant 0 : index
    %1 = vector.load %arg2[%c0_1, %c0_2] : memref<128x128xbf16, #tpu.memory_space<vmem>>, vector<128x128xbf16>
    %cst = arith.constant dense<0.000000e+00> : vector<128x128xf32>
    %2 = tpu.matmul %0, %1, %cst {dimension_numbers = #tpu.dot_dimension_numbers<[1], [0], [0], [1], [0, 0, 1, 1], [], []>} : vector<128x128xbf16>, vector<128x128xbf16>, vector<128x128xf32> -> vector<128x128xf32>
    %c0_3 = arith.constant 0 : index
    %c0_4 = arith.constant 0 : index
    %3 = vector.load %arg3[%c0_3, %c0_4] : memref<1x128xf32, #tpu.memory_space<vmem>>, vector<1x128xf32>
    %4 = vector.broadcast %3 : vector<1x128xf32> to vector<128x128xf32>
    %5 = arith.addf %2, %4 : vector<128x128xf32>
    %cst_5 = arith.constant 0.000000e+00 : f32
    %6 = vector.broadcast %cst_5 : f32 to vector<128x128xf32>
    %7 = arith.maximumf %5, %6 : vector<128x128xf32>
    %8 = arith.truncf %7 : vector<128x128xf32> to vector<128x128xbf16>
    %c0_6 = arith.constant 0 : index
    %c0_7 = arith.constant 0 : index
    %9 = vector.load %arg4[%c0_6, %c0_7] : memref<128x128xbf16, #tpu.memory_space<vmem>>, vector<128x128xbf16>
    %cst_8 = arith.constant dense<0.000000e+00> : vector<128x128xf32>
    %10 = tpu.matmul %8, %9, %cst_8 {dimension_numbers = #tpu.dot_dimension_numbers<[1], [0], [0], [1], [0, 0, 1, 1], [], []>} : vector<128x128xbf16>, vector<128x128xbf16>, vector<128x128xf32> -> vector<128x128xf32>
    %c0_9 = arith.constant 0 : index
    %c0_10 = arith.constant 0 : index
    %11 = vector.load %arg5[%c0_9, %c0_10] : memref<1x128xf32, #tpu.memory_space<vmem>>, vector<1x128xf32>
    %12 = vector.broadcast %11 : vector<1x128xf32> to vector<128x128xf32>
    %13 = arith.addf %10, %12 : vector<128x128xf32>
    %cst_11 = arith.constant 0.000000e+00 : f32
    %14 = vector.broadcast %cst_11 : f32 to vector<128x128xf32>
    %15 = arith.maximumf %13, %14 : vector<128x128xf32>
    %16 = arith.truncf %15 : vector<128x128xf32> to vector<128x128xbf16>
    %c0_12 = arith.constant 0 : index
    %c0_13 = arith.constant 0 : index
    %17 = vector.load %arg6[%c0_12, %c0_13] : memref<128x128xbf16, #tpu.memory_space<vmem>>, vector<128x128xbf16>
    %cst_14 = arith.constant dense<0.000000e+00> : vector<128x128xf32>
    %18 = tpu.matmul %16, %17, %cst_14 {dimension_numbers = #tpu.dot_dimension_numbers<[1], [0], [0], [1], [0, 0, 1, 1], [], []>} : vector<128x128xbf16>, vector<128x128xbf16>, vector<128x128xf32> -> vector<128x128xf32>
    %c0_15 = arith.constant 0 : index
    %c0_16 = arith.constant 0 : index
    %19 = vector.load %arg7[%c0_15, %c0_16] : memref<1x128xf32, #tpu.memory_space<vmem>>, vector<1x128xf32>
    %20 = vector.broadcast %19 : vector<1x128xf32> to vector<128x128xf32>
    %21 = arith.addf %18, %20 : vector<128x128xf32>
    %22 = arith.truncf %21 : vector<128x128xf32> to vector<128x128xbf16>
    %c0_17 = arith.constant 0 : index
    %c0_18 = arith.constant 0 : index
    %23 = vector.load %arg8[%c0_17, %c0_18] : memref<128x128xbf16, #tpu.memory_space<vmem>>, vector<128x128xbf16>
    %cst_19 = arith.constant dense<0.000000e+00> : vector<128x128xf32>
    %24 = tpu.matmul %22, %23, %cst_19 {dimension_numbers = #tpu.dot_dimension_numbers<[1], [0], [0], [1], [0, 0, 1, 1], [], []>} : vector<128x128xbf16>, vector<128x128xbf16>, vector<128x128xf32> -> vector<128x128xf32>
    %c0_20 = arith.constant 0 : index
    %c0_21 = arith.constant 0 : index
    %25 = vector.load %arg9[%c0_20, %c0_21] : memref<1x128xf32, #tpu.memory_space<vmem>>, vector<1x128xf32>
    %26 = vector.broadcast %25 : vector<1x128xf32> to vector<128x128xf32>
    %27 = arith.addf %24, %26 : vector<128x128xf32>
    %cst_22 = arith.constant 0.000000e+00 : f32
    %28 = vector.broadcast %cst_22 : f32 to vector<128x128xf32>
    %29 = arith.maximumf %27, %28 : vector<128x128xf32>
    %30 = arith.truncf %29 : vector<128x128xf32> to vector<128x128xbf16>
    %c0_23 = arith.constant 0 : index
    %c0_24 = arith.constant 0 : index
    %31 = vector.load %arg10[%c0_23, %c0_24] : memref<128x128xbf16, #tpu.memory_space<vmem>>, vector<128x128xbf16>
    %cst_25 = arith.constant dense<0.000000e+00> : vector<128x128xf32>
    %32 = tpu.matmul %30, %31, %cst_25 {dimension_numbers = #tpu.dot_dimension_numbers<[1], [0], [0], [1], [0, 0, 1, 1], [], []>} : vector<128x128xbf16>, vector<128x128xbf16>, vector<128x128xf32> -> vector<128x128xf32>
    %c0_26 = arith.constant 0 : index
    %c0_27 = arith.constant 0 : index
    %33 = vector.load %arg11[%c0_26, %c0_27] : memref<1x128xf32, #tpu.memory_space<vmem>>, vector<1x128xf32>
    %34 = vector.broadcast %33 : vector<1x128xf32> to vector<128x128xf32>
    %35 = arith.addf %32, %34 : vector<128x128xf32>
    %cst_28 = arith.constant 0.000000e+00 : f32
    %36 = vector.broadcast %cst_28 : f32 to vector<128x128xf32>
    %37 = arith.maximumf %35, %36 : vector<128x128xf32>
    %38 = arith.truncf %37 : vector<128x128xf32> to vector<128x128xbf16>
    %c0_29 = arith.constant 0 : index
    %c0_30 = arith.constant 0 : index
    %39 = vector.load %arg12[%c0_29, %c0_30] : memref<128x128xbf16, #tpu.memory_space<vmem>>, vector<128x128xbf16>
    %cst_31 = arith.constant dense<0.000000e+00> : vector<128x128xf32>
    %40 = tpu.matmul %38, %39, %cst_31 {dimension_numbers = #tpu.dot_dimension_numbers<[1], [0], [0], [1], [0, 0, 1, 1], [], []>} : vector<128x128xbf16>, vector<128x128xbf16>, vector<128x128xf32> -> vector<128x128xf32>
    %c0_32 = arith.constant 0 : index
    %c0_33 = arith.constant 0 : index
    %41 = vector.load %arg13[%c0_32, %c0_33] : memref<1x128xf32, #tpu.memory_space<vmem>>, vector<1x128xf32>
    %42 = vector.broadcast %41 : vector<1x128xf32> to vector<128x128xf32>
    %43 = arith.addf %40, %42 : vector<128x128xf32>
    %cst_34 = arith.constant 0.000000e+00 : f32
    %44 = vector.broadcast %cst_34 : f32 to vector<128x128xf32>
    %45 = arith.maximumf %43, %44 : vector<128x128xf32>
    %c0_35 = arith.constant 0 : index
    %c0_36 = arith.constant 0 : index
    %46 = vector.load %arg14[%c0_35, %c0_36] : memref<128x128xf32, #tpu.memory_space<vmem>>, vector<128x128xf32>
    tpu.vector_store %arg14[%c0_35, %c0_36], %45 {strides = array<i32>} : memref<128x128xf32, #tpu.memory_space<vmem>>, vector<128x128xf32>,
    return
  }
  func.func @transform_0(%arg0: i32) -> (i32, i32) {
    %c0_i32 = arith.constant 0 : i32
    %c0_i32_0 = arith.constant 0 : i32
    return %arg0, %c0_i32 : i32, i32
  }
  func.func @transform_1(%arg0: i32) -> (i32, i32) {
    %c0_i32 = arith.constant 0 : i32
    %c0_i32_0 = arith.constant 0 : i32
    %c0_i32_1 = arith.constant 0 : i32
    return %c0_i32, %c0_i32_0 : i32, i32
  }
  func.func @transform_2(%arg0: i32) -> (i32, i32) {
    %c0_i32 = arith.constant 0 : i32
    %c0_i32_0 = arith.constant 0 : i32
    %c0_i32_1 = arith.constant 0 : i32
    return %c0_i32, %c0_i32_0 : i32, i32
  }
  func.func @transform_3(%arg0: i32) -> (i32, i32) {
    %c0_i32 = arith.constant 0 : i32
    %c0_i32_0 = arith.constant 0 : i32
    %c0_i32_1 = arith.constant 0 : i32
    return %c0_i32, %c0_i32_0 : i32, i32
  }
  func.func @transform_4(%arg0: i32) -> (i32, i32) {
    %c0_i32 = arith.constant 0 : i32
    %c0_i32_0 = arith.constant 0 : i32
    %c0_i32_1 = arith.constant 0 : i32
    return %c0_i32, %c0_i32_0 : i32, i32
  }
  func.func @transform_5(%arg0: i32) -> (i32, i32) {
    %c0_i32 = arith.constant 0 : i32
    %c0_i32_0 = arith.constant 0 : i32
    %c0_i32_1 = arith.constant 0 : i32
    return %c0_i32, %c0_i32_0 : i32, i32
  }
  func.func @transform_6(%arg0: i32) -> (i32, i32) {
    %c0_i32 = arith.constant 0 : i32
    %c0_i32_0 = arith.constant 0 : i32
    %c0_i32_1 = arith.constant 0 : i32
    return %c0_i32, %c0_i32_0 : i32, i32
  }
  func.func @transform_7(%arg0: i32) -> (i32, i32) {
    %c0_i32 = arith.constant 0 : i32
    %c0_i32_0 = arith.constant 0 : i32
    %c0_i32_1 = arith.constant 0 : i32
    return %c0_i32, %c0_i32_0 : i32, i32
  }
  func.func @transform_8(%arg0: i32) -> (i32, i32) {
    %c0_i32 = arith.constant 0 : i32
    %c0_i32_0 = arith.constant 0 : i32
    %c0_i32_1 = arith.constant 0 : i32
    return %c0_i32, %c0_i32_0 : i32, i32
  }
  func.func @transform_9(%arg0: i32) -> (i32, i32) {
    %c0_i32 = arith.constant 0 : i32
    %c0_i32_0 = arith.constant 0 : i32
    %c0_i32_1 = arith.constant 0 : i32
    return %c0_i32, %c0_i32_0 : i32, i32
  }
  func.func @transform_10(%arg0: i32) -> (i32, i32) {
    %c0_i32 = arith.constant 0 : i32
    %c0_i32_0 = arith.constant 0 : i32
    %c0_i32_1 = arith.constant 0 : i32
    return %c0_i32, %c0_i32_0 : i32, i32
  }
  func.func @transform_11(%arg0: i32) -> (i32, i32) {
    %c0_i32 = arith.constant 0 : i32
    %c0_i32_0 = arith.constant 0 : i32
    %c0_i32_1 = arith.constant 0 : i32
    return %c0_i32, %c0_i32_0 : i32, i32
  }
  func.func @transform_12(%arg0: i32) -> (i32, i32) {
    %c0_i32 = arith.constant 0 : i32
    %c0_i32_0 = arith.constant 0 : i32
    %c0_i32_1 = arith.constant 0 : i32
    return %c0_i32, %c0_i32_0 : i32, i32
  }
  func.func @transform_13(%arg0: i32) -> (i32, i32) {
    %c0_i32 = arith.constant 0 : i32
    %c0_i32_0 = arith.constant 0 : i32
    return %arg0, %c0_i32 : i32, i32
  }
}

</mosaic_0001>

<bundles_post_ra>
// kernel: tpu_custom_call.1
= control target key start
LH: loop header
LB: loop body
LE: loop exit
PB: predicated region body
PF: predicated region fallthrough
CT: control target
= control target key end

     0   :  { %s3200_s0 = inlined_call_operand.hbm [shape: bf16[256,128], index: 0, kind: input, shape index: {}]   ;;  %s3201_s1 = inlined_call_operand.hbm [shape: bf16[128,128], index: 1, kind: input, shape index: {}]   ;;  %s3202_s2 = inlined_call_operand.vmem [shape: f32[1,128], index: 2, kind: input, shape index: {}]   ;;  %s3203_s3 = inlined_call_operand.hbm [shape: bf16[128,128], index: 3, kind: input, shape index: {}]   ;;  %s3204_s4 = inlined_call_operand.vmem [shape: f32[1,128], index: 4, kind: input, shape index: {}]   ;;  %s3205_s5 = inlined_call_operand.hbm [shape: bf16[128,128], index: 5, kind: input, shape index: {}]   ;;  %s3206_s6 = inlined_call_operand.vmem [shape: f32[1,128], index: 6, kind: input, shape index: {}]   ;;  %s3207_s7 = inlined_call_operand.hbm [shape: bf16[128,128], index: 7, kind: input, shape index: {}]   ;;  %s3208_s8 = inlined_call_operand.vmem [shape: f32[1,128], index: 8, kind: input, shape index: {}]   ;;  %s3209_s9 = inlined_call_operand.hbm [shape: bf16[128,128], index: 9, kind: input, shape index: {}]   ;;  %s3210_s10 = inlined_call_operand.vmem [shape: f32[1,128], index: 10, kind: input, shape index: {}]   ;;  %s3211_s11 = inlined_call_operand.hbm [shape: bf16[128,128], index: 11, kind: input, shape index: {}]   ;;  %s3212_s12 = inlined_call_operand.vmem [shape: f32[1,128], index: 12, kind: input, shape index: {}]   ;;  %s3213_s13 = inlined_call_operand.hbm [shape: f32[256,128], index: 13, kind: output, shape index: {}]  }
   0x1   :  { %3219 = sst [smem:[#allocation20_spill]] %s3201_s1 }
   0x2   :  { %3220 = sst [smem:[#allocation21_spill]] %s3206_s6 }
   0x3   :  { %3221 = sst [smem:[#allocation22_spill]] %s3208_s8 }
   0x4   :  { %3222 = sst [smem:[#allocation23_spill]] %s3210_s10 }
   0x5   :  { %3223 = sst [smem:[#allocation24_spill]] %s3212_s12 }
   0x6   :  { %3224 = sst [smem:[#allocation25_spill]] %s3213_s13 }
   0x7   :  { %18 = vsyncpa [#allocation3], 0 }
   0x8   :  { %20 = vsyncpa [#allocation3 + $0x1], 0 }
   0x9   :  { %21 = vsyncpa [#allocation6], 0 }
   0xa   :  { %22 = vsyncpa [#allocation9], 0 }
   0xb   :  { %23 = vsyncpa [#allocation12], 0 }
   0xc   :  { %24 = vsyncpa [#allocation4], 0 }
   0xd   :  { %26 = vsyncpa [#allocation4 + $0x1], 0  ;;  %s2806_s25 = smov 0   ;;  %s2808_s26 = smov 0  }
   0xe   :  { %s2810_s27 = smov 0   ;;  %s2812_s28 = smov 0  }
   0xf LB: > { %s2724_s29 = smov [#allocation5]   ;;  %s2827_s14 = sadd.s32 4294967295, %s2722_s28   ;;  %s2722_s28 = sphi %s2812_s28, %s3254_s28   ;;  %s2718_s27 = sphi %s2810_s27, %s3253_s27   ;;  %s2714_s26 = sphi %s2808_s26, %s3252_s26   ;;  %s2710_s25 = sphi %s2806_s25, %s3251_s25  }
  0x10   : > { %s353_s30 = sshll.u32 %s2724_s29, 4  ;;  %p1902_p0 = scmp.ge.s32.totalorder %s2722_s28, 1  ;;  %s2832_s30 = int_to_ptr.vmem [resolvable:$true] %s353_s30 }
  0x11   : > { %p3215_p1 = scmp.eq.s32.totalorder %s2827_s14, 0  ;;  %p341_p2 = scmp.lt.s32.totalorder %s2722_s28, 3 }
  0x12   : > { %s2725_s16 = smov [#allocation8]   ;;  %s2726_s19 = smov [#allocation11]  }
  0x13   : > { %p2834_p3 = pnand %p1902_p0, %p341_p2  ;;  %s385_s17 = sshll.u32 %s2725_s16, 4  ;;  %s2847_s17 = int_to_ptr.vmem [resolvable:$true] %s385_s17 }
  0x14   : > { %s417_s20 = sshll.u32 %s2726_s19, 4  ;;  %s3227_s1 = sld [smem:[#allocation20_spill]]  ;;  %s2849_s20 = int_to_ptr.vmem [resolvable:$true] %s417_s20 }
  0x15   : > { %s3225_s15 = scalar_select %p2834_p3, 1, 0 }
  0x16   : > { %p2307_p5 = pneg %p2834_p3 }
  0x18   : > { %p2843_p6 = pnand %p2307_p5, %p3215_p1 }
  0x1a   : > { %s2446_s23 = scalar_lea.hbm %s3227_s1, 1024  ;;  %p2859_p8 = pneg %p2843_p6 }
  0x1b   : > { %p2447_p7 = scmp.ne.s32.totalorder %s3227_s1, %s2446_s23  ;;  %p2453_p11 = scmp.lt.u32.totalorder %s2446_s23, %s3227_s1 }
  0x1d   : > { %p2449_p9 = pnand %p2859_p8, %p2447_p7 }
  0x1f   : > { %p2450_p10 = pneg %p2449_p9 }
  0x21   : > { %p2455_p12 = pnand %p2453_p11, %p2450_p10 }
  0x23   : > { %2458 = shalt.err (!%p2455_p12)
}
  0x24   : > { %s2459_s21 = scalar_lea.vmem %s2832_s30, 1024  ;;  %p2467_p5 = scmp.lt.s32.totalorder %s2832_s30, %s2832_s30 }
  0x25   : > { %p2460_p13 = scmp.ne.s32.totalorder %s2832_s30, %s2459_s21  ;;  %p2468_p4 = scmp.lt.s32.totalorder %s2459_s21, %s2459_s21 }
  0x27   : > { %p2462_p0 = pnand %p2460_p13, %p2859_p8  ;;  %p2469_p7 = por %p2468_p4, %p2467_p5 }
  0x29   : > { %p2463_p2 = pneg %p2462_p0 }
  0x2b   : > { %p2470_p9 = pnand %p2469_p7, %p2463_p2 }
  0x2d   : > { %2473 = shalt.err (!%p2470_p9)
}
  0x2e   : > { %s3217_s22 = smov 64   ;;  %s2728_s13 = smov 4  }
  0x2f   : > { %2310 = dma.hbm_to_vmem [thread:$0]  (!%p2843_p6), %s3227_s1, 1024, %s2832_s30, [#allocation6], %s3217_s22, %s3217_s22, %s2728_s13  }
  0x30   : > { %s2474_s21 = scalar_lea.hbm %s3205_s5, 1024 }
  0x31   : > { %p2475_p4 = scmp.ne.s32.totalorder %s3205_s5, %s2474_s21  ;;  %p2481_p12 = scmp.lt.u32.totalorder %s2474_s21, %s3205_s5 }
  0x33   : > { %p2477_p10 = pnand %p2475_p4, %p2859_p8 }
  0x35   : > { %p2478_p11 = pneg %p2477_p10 }
  0x37   : > { %p2483_p13 = pnand %p2481_p12, %p2478_p11 }
  0x39   : > { %2486 = shalt.err (!%p2483_p13)
}
  0x3a   : > { %s2487_s30 = scalar_lea.vmem %s2847_s17, 1024  ;;  %p2495_p7 = scmp.lt.s32.totalorder %s2847_s17, %s2847_s17 }
  0x3b   : > { %p2488_p0 = scmp.ne.s32.totalorder %s2847_s17, %s2487_s30  ;;  %p2496_p9 = scmp.lt.s32.totalorder %s2487_s30, %s2487_s30 }
  0x3d   : > { %p2490_p2 = pnand %p2488_p0, %p2859_p8  ;;  %p2497_p4 = por %p2496_p9, %p2495_p7 }
  0x3f   : > { %p2491_p5 = pneg %p2490_p2 }
  0x41   : > { %p2498_p10 = pnand %p2497_p4, %p2491_p5 }
  0x43   : > { %2501 = shalt.err (!%p2498_p10)
}
  0x44   : > { %2316 = dma.hbm_to_vmem [thread:$0]  (!%p2843_p6), %s3205_s5, 1024, %s2847_s17, [#allocation9], %s3217_s22, %s3217_s22, %s2728_s13  }
  0x45   : > { %s2502_s23 = scalar_lea.hbm %s3209_s9, 1024 }
  0x46   : > { %p2503_p11 = scmp.ne.s32.totalorder %s3209_s9, %s2502_s23  ;;  %p2509_p0 = scmp.lt.u32.totalorder %s2502_s23, %s3209_s9 }
  0x48   : > { %p2505_p12 = pnand %p2503_p11, %p2859_p8 }
  0x4a   : > { %p2506_p13 = pneg %p2505_p12 }
  0x4c   : > { %p2511_p2 = pnand %p2509_p0, %p2506_p13 }
  0x4e   : > { %2514 = shalt.err (!%p2511_p2)
}
  0x4f   : > { %s2515_s17 = scalar_lea.vmem %s2849_s20, 1024  ;;  %p2523_p4 = scmp.lt.s32.totalorder %s2849_s20, %s2849_s20 }
  0x50   : > { %p2516_p5 = scmp.ne.s32.totalorder %s2849_s20, %s2515_s17  ;;  %p2524_p10 = scmp.lt.s32.totalorder %s2515_s17, %s2515_s17 }
  0x52   : > { %p2518_p7 = pnand %p2516_p5, %p2859_p8  ;;  %p2525_p11 = por %p2524_p10, %p2523_p4 }
  0x54   : > { %p2519_p9 = pneg %p2518_p7 }
  0x56   : > { %p2526_p12 = pnand %p2525_p11, %p2519_p9 }
  0x58   : > { %2529 = shalt.err (!%p2526_p12)
}
  0x59   : > { %2322 = dma.hbm_to_vmem [thread:$0]  (!%p2843_p6), %s3209_s9, 1024, %s2849_s20, [#allocation12], %s3217_s22, %s3217_s22, %s2728_s13  }
  0x5a   : > { %s2729_s8 = smov [#allocation7]   ;;  %s2730_s12 = smov [#allocation10]  }
  0x5b   : > { %s369_s10 = sshll.u32 %s2729_s8, 4  ;;  %s401_s23 = sshll.u32 %s2730_s12, 4  ;;  %s370_s10 = int_to_ptr.vmem [resolvable:$true] %s369_s10  ;;  %s402_s23 = int_to_ptr.vmem [resolvable:$true] %s401_s23 }
  0x5c   : > { %s2530_s19 = scalar_lea.hbm %s3203_s3, 1024 }
  0x5d   : > { %p2531_p13 = scmp.ne.s32.totalorder %s3203_s3, %s2530_s19  ;;  %p2537_p5 = scmp.lt.u32.totalorder %s2530_s19, %s3203_s3 }
  0x5f   : > { %p2533_p0 = pnand %p2531_p13, %p2859_p8 }
  0x61   : > { %p2534_p2 = pneg %p2533_p0 }
  0x63   : > { %p2539_p7 = pnand %p2537_p5, %p2534_p2 }
  0x65   : > { %2542 = shalt.err (!%p2539_p7)
}
  0x66   : > { %s2543_s20 = scalar_lea.vmem %s370_s10, 1024  ;;  %p2551_p11 = scmp.lt.s32.totalorder %s370_s10, %s370_s10 }
  0x67   : > { %p2544_p9 = scmp.ne.s32.totalorder %s370_s10, %s2543_s20  ;;  %p2552_p12 = scmp.lt.s32.totalorder %s2543_s20, %s2543_s20 }
  0x69   : > { %p2546_p4 = pnand %p2544_p9, %p2859_p8  ;;  %p2553_p1 = por %p2552_p12, %p2551_p11 }
  0x6b   : > { %p2547_p10 = pneg %p2546_p4 }
  0x6d   : > { %p2554_p3 = pnand %p2553_p1, %p2547_p10 }
  0x6f   : > { %2557 = shalt.err (!%p2554_p3)
}
  0x70   : > { %2313 = dma.hbm_to_vmem [thread:$0]  (!%p2843_p6), %s3203_s3, 1024, %s370_s10, [#allocation6], %s3217_s22, %s3217_s22, %s2728_s13  }
  0x71   : > { %s2558_s24 = scalar_lea.hbm %s3207_s7, 1024 }
  0x72   : > { %p2559_p1 = scmp.ne.s32.totalorder %s3207_s7, %s2558_s24  ;;  %p2565_p0 = scmp.lt.u32.totalorder %s2558_s24, %s3207_s7 }
  0x74   : > { %p2561_p3 = pnand %p2559_p1, %p2859_p8 }
  0x76   : > { %p2562_p13 = pneg %p2561_p3 }
  0x78   : > { %p2567_p2 = pnand %p2565_p0, %p2562_p13 }
  0x7a   : > { %2570 = shalt.err (!%p2567_p2)
}
  0x7b   : > { %s2571_s30 = scalar_lea.vmem %s402_s23, 1024  ;;  %p2579_p4 = scmp.lt.s32.totalorder %s402_s23, %s402_s23 }
  0x7c   : > { %p2572_p5 = scmp.ne.s32.totalorder %s402_s23, %s2571_s30  ;;  %p2580_p10 = scmp.lt.s32.totalorder %s2571_s30, %s2571_s30 }
  0x7e   : > { %p2574_p7 = pnand %p2572_p5, %p2859_p8  ;;  %p2581_p11 = por %p2580_p10, %p2579_p4 }
  0x80   : > { %p2575_p9 = pneg %p2574_p7 }
  0x82   : > { %p2582_p12 = pnand %p2581_p11, %p2575_p9 }
  0x84   : > { %2585 = shalt.err (!%p2582_p12)
}
  0x85   : > { %2319 = dma.hbm_to_vmem [thread:$0]  (!%p2843_p6), %s3207_s7, 1024, %s402_s23, [#allocation9], %s3217_s22, %s3217_s22, %s2728_s13  }
  0x86   : > { %s2731_s1 = smov [#allocation13]   ;;  %s2586_s24 = scalar_lea.hbm %s3211_s11, 1024 }
  0x87   : > { %s433_s6 = sshll.u32 %s2731_s1, 4  ;;  %p2587_p1 = scmp.ne.s32.totalorder %s3211_s11, %s2586_s24  ;;  %s434_s6 = int_to_ptr.vmem [resolvable:$true] %s433_s6 }
  0x88   : > { %p2593_p0 = scmp.lt.u32.totalorder %s2586_s24, %s3211_s11 }
  0x89   : > { %p2589_p3 = pnand %p2587_p1, %p2859_p8 }
  0x8b   : > { %p2590_p13 = pneg %p2589_p3 }
  0x8d   : > { %p2595_p2 = pnand %p2593_p0, %p2590_p13 }
  0x8f   : > { %2598 = shalt.err (!%p2595_p2)
}
  0x90   : > { %s2599_s23 = scalar_lea.vmem %s434_s6, 1024  ;;  %p2607_p4 = scmp.lt.s32.totalorder %s434_s6, %s434_s6 }
  0x91   : > { %p2600_p5 = scmp.ne.s32.totalorder %s434_s6, %s2599_s23  ;;  %p2608_p10 = scmp.lt.s32.totalorder %s2599_s23, %s2599_s23 }
  0x93   : > { %p2602_p7 = pnand %p2600_p5, %p2859_p8  ;;  %p2609_p11 = por %p2608_p10, %p2607_p4 }
  0x95   : > { %p2603_p9 = pneg %p2602_p7 }
  0x97   : > { %p2610_p12 = pnand %p2609_p11, %p2603_p9 }
  0x99   : > { %2613 = shalt.err (!%p2610_p12)
}
  0x9a   : > { %2325 = dma.hbm_to_vmem [thread:$0]  (!%p2843_p6), %s3211_s11, 1024, %s434_s6, [#allocation12], %s3217_s22, %s3217_s22, %s2728_s13  }
  0x9b   : > { %s1901_s18 = sadd.s32 4294967294, %s2722_s28   ;;  %s3000_s16 = sadd.s32 1, %s2722_s28  }
  0x9c   : > { %s36_s20 = ssub.s32 %s2722_s28, %s3000_s16  ;;  %s39_s1 = sadd.s32 1, %s2718_s27 }
  0x9d   : > { %p37_p8 = scmp.eq.s32.totalorder %s36_s20, 0  ;;  %p46_p1 = scmp.ne.s32.totalorder %s2718_s27, %s2714_s26 }
  0x9e   : > { %p47_p3 = scmp.eq.s32.totalorder %s2722_s28, 0  ;;  %p52_p13 = scmp.ne.s32.totalorder %s2714_s26, %s2710_s25 }
  0x9f   : > { %s3011_s8 = scalar_select %p37_p8, %s2718_s27, %s39_s1  }
  0xa0   : > { %p3013_p0 = por %p47_p3, %p46_p1  ;;  %p3230_p2 = scmp.eq.s32.totalorder %s2827_s14, 0 }
  0xa1   : > { %p328_p5 = scmp.eq.s32.totalorder %s2827_s14, 1  ;;  %p334_p7 = scmp.eq.s32.totalorder %s1901_s18, 1 }
  0xa2   : > { %p3019_p6 = por %p3230_p2, %p52_p13  ;;  %p2340_p9 = scmp.lt.s32.totalorder %s2722_s28, 2 }
  0xa3   : > { %s450_s24 = sand.u32 1, %s2718_s27   ;;  %p3026_p4 = por %p328_p5, %p46_p1 }
  0xa4   : > { %p3030_p10 = por %p334_p7, %p52_p13  ;;  %s1910_s21 = sshll.u32 %s450_s24, 6 }
  0xa5   : > { %s3232_s29 = scalar_select %p3026_p4, 1, 0 }
  0xa6   : > { %s3233_s19 = scalar_select %p3030_p10, 1, 0 }
  0xa7   : > { %s1989_s17 = sshll.u32 %s2722_s28, 10  ;;  %s454_s18 = scalar_lea.vmem [#allocation2], %s1910_s21 }
  0xa8   : > { %s3038_s10 = scalar_lea.hbm %s3200_s0, %s1989_s17  ;;  %s461_s20 = sshll.u32 %s454_s18, 4  ;;  %s3040_s20 = int_to_ptr.vmem [resolvable:$true] %s461_s20 }
  0xa9   : > { %p3044_p11 = pnand %p2340_p9, %p3013_p0  ;;  %s3048_s22 = scalar_lea.sflag [#allocation3], %s450_s24 }
  0xaa   : > { %s2614_s23 = scalar_lea.hbm %s3038_s10, 1024  ;;  %s2619_s12 = scalar_lea.hbm %s3200_s0, 2048 }
  0xab   : > { %p2615_p12 = scmp.ne.s32.totalorder %s3038_s10, %s2614_s23  ;;  %p2616_p8 = pneg %p3044_p11 }
  0xac   : > { %p2620_p13 = scmp.lt.u32.totalorder %s3038_s10, %s3200_s0  ;;  %p2621_p0 = scmp.lt.u32.totalorder %s2619_s12, %s2614_s23 }
  0xad   : > { %p2617_p1 = pnand %p2616_p8, %p2615_p12  ;;  %p2623_p5 = scmp.lt.u32.totalorder %s2614_s23, %s3038_s10 }
  0xae   : > { %p2622_p2 = por %p2621_p0, %p2620_p13 }
  0xaf   : > { %p2618_p3 = pneg %p2617_p1 }
  0xb0   : > { %p2624_p7 = por %p2623_p5, %p2622_p2 }
  0xb2   : > { %p2625_p9 = pnand %p2624_p7, %p2618_p3 }
  0xb4   : > { %2628 = shalt.err (!%p2625_p9)
}
  0xb5   : > { %s2629_s24 = scalar_lea.vmem %s3040_s20, 1024  ;;  %s2732_s21 = smov [#allocation2]  }
  0xb6   : > { %p2630_p12 = scmp.ne.s32.totalorder %s3040_s20, %s2629_s24  ;;  %s2634_s17 = sshll.u32 %s2732_s21, 4  ;;  %s2635_s17 = int_to_ptr.vmem [resolvable:$false] %s2634_s17 }
  0xb7   : > { %s2636_s30 = scalar_lea.vmem %s2635_s17, 2048  ;;  %p2637_p4 = scmp.lt.s32.totalorder %s3040_s20, %s2635_s17 }
  0xb8   : > { %p2632_p1 = pnand %p2630_p12, %p2616_p8  ;;  %p2638_p13 = scmp.lt.s32.totalorder %s2636_s30, %s2629_s24 }
  0xba   : > { %p2633_p10 = pneg %p2632_p1  ;;  %p2639_p0 = por %p2638_p13, %p2637_p4 }
  0xbc   : > { %p2640_p2 = pnand %p2639_p0, %p2633_p10 }
  0xbe   : > { %2643 = shalt.err (!%p2640_p2)
}
  0xbf   : > { %s3235_s23 = smov 64   ;;  %p3236_p8 = scmp.ne.s32.totalorder %s3225_s15, 0 }
  0xc0   : > { %2329 = dma.hbm_to_vmem [thread:$0]  (!%p3044_p11), %s3038_s10, 1024, %s3040_s20, %s3048_s22, %s3235_s23, %s3235_s23, %s2728_s13  }
  0xc1   : > { %473 = sbr.rel (%p3236_p8) target bundleno = 1610 (0x64a), region = 72  ;;  %s3082_s12 = sand.u32 (!%p3236_p8), 1, %s2714_s26  }
  0xc2   : > { %s1914_s18 = sshll.u32 (!%p3236_p8), %s3082_s12, 6  ;;  %s476_s24 = scalar_lea.sflag (!%p3236_p8), [#allocation3], %s3082_s12 }
  0xc3   : > { %s3086_s21 = scalar_lea.vmem (!%p3236_p8), [#allocation2], %s1914_s18 }
  0xc8   : > { %2689 = dma.done.wait (%p3019_p6), %s476_s24, 1024  }
  0xc9   : > { %2691 = vsyncadd (%p3019_p6), %s476_s24, 4294966272  ;;  %p3237_p4 = scmp.eq.s32.totalorder %s2827_s14, 0 }
  0xcb   : > { %2693 = dma.done.wait (%p3237_p4), [#allocation6], 2048   ;;  %p3238_p10 = pmov %p3237_p4 }
  0xcc   : > { %p3239_p11 = pmov %p3237_p4 }
  0xcd   : > { %2695 = vsyncadd (%p3238_p10), [#allocation6], 4294965248 }
  0xce   : > { %2697 = dma.done.wait (%p3239_p11), [#allocation9], 2048   ;;  %p3240_p3 = pmov %p3237_p4 }
  0xd0   : > { %2699 = vsyncadd (%p3240_p3), [#allocation9], 4294965248  ;;  %p3241_p5 = pmov %p3240_p3 }
  0xd1   : > { %p3242_p7 = pmov %p3240_p3 }
  0xd2   : > { %2701 = dma.done.wait (%p3241_p5), [#allocation12], 2048  }
  0xd3   : > { %2703 = vsyncadd (%p3242_p7), [#allocation12], 4294965248  ;;  %v2390_v0 = vld [vmem:[#allocation5] sm:$0xff]   ;;  %v2391_v1 = vld [vmem:[#allocation5 + $0x8] sm:$0xff]   ;;  %s3243_s1 = sld [smem:[#allocation21_spill]]  ;;  %s3244_s23 = sld [smem:[#allocation22_spill]] }
  0xd4   : > { %2087 = vmatprep.subr.bf16.mxu0 %v2390_v0  ;;  %v2392_v2 = vld [vmem:[#allocation5 + $0x10] sm:$0xff]   ;;  %v2393_v3 = vld [vmem:[#allocation5 + $0x18] sm:$0xff]   ;;  %v2398_v4 = vld [vmem:[%s3086_s21] sm:$0xff]   ;;  %s3246_s13 = sld [smem:[#allocation24_spill]]  ;;  %s1921_s6 = sshll.u32 %s3082_s12, 7 }
  0xd5   : > { %2088 = vmatpush3.bf16.msra.mxu0 %v2390_v0  ;;  %2103 = vmatprep.mubr.bf16.mxu0 %v2398_v4  ;;  %v2394_v5 = vld [vmem:[#allocation5 + $0x20] sm:$0xff]   ;;  %v2395_v6 = vld [vmem:[#allocation5 + $0x28] sm:$0xff]   ;;  %v2396_v9 = vld [vmem:[#allocation5 + $0x30] sm:$0xff]   ;;  %s3131_s10 = scalar_lea.vmem [#allocation14], %s1921_s6  ;;  %s1990_s20 = sshll.u32 %s2827_s14, 11 }
  0xd6   : > { %2089 = vmatprep.subr.bf16.mxu0 %v2391_v1  ;;  %v2406_v7 = vld [vmem:[#allocation7] sm:$0xff]   ;;  %v2407_v8 = vld [vmem:[#allocation7 + $0x8] sm:$0xff]   ;;  %v2408_v10 = vld [vmem:[#allocation7 + $0x10] sm:$0xff]   ;;  %s1758_s14 = scalar_lea.sflag [#allocation4], %s3082_s12  ;;  %p3248_p9 = scmp.ne.s32.totalorder %s3232_s29, 0 }
  0xd7   : > { %2119 = vmatprep.subr.bf16.mxu1 %v2406_v7  ;;  %v2397_v11 = vld [vmem:[#allocation5 + $0x38] sm:$0xff]   ;;  %v2410_v13 = vld [vmem:[#allocation7 + $0x20] sm:$0xff]   ;;  %v2399_v14 = vld [vmem:[%s3086_s21 + $0x8] sm:$0xff]  }
  0xd8   : > { %2120 = vmatpush3.bf16.msra.mxu1 %v2406_v7  ;;  %v2409_v12 = vld [vmem:[#allocation7 + $0x18] sm:$0xff]   ;;  %v2400_v15 = vld [vmem:[%s3086_s21 + $0x10] sm:$0xff]   ;;  %v2411_v16 = vld [vmem:[#allocation7 + $0x28] sm:$0xff]  }
  0xd9   : > { %2090 = vmatpush3.bf16.msra.mxu0 %v2391_v1  ;;  %2121 = vmatprep.subr.bf16.mxu1 %v2407_v8  ;;  %v2401_v17 = vld [vmem:[%s3086_s21 + $0x18] sm:$0xff]   ;;  %v2402_v18 = vld [vmem:[%s3086_s21 + $0x20] sm:$0xff]   ;;  %v2403_v19 = vld [vmem:[%s3086_s21 + $0x28] sm:$0xff]  }
  0xda   : > { %2091 = vmatprep.subr.bf16.mxu0 %v2392_v2  ;;  %v2404_v20 = vld [vmem:[%s3086_s21 + $0x30] sm:$0xff]   ;;  %v2405_v21 = vld [vmem:[%s3086_s21 + $0x38] sm:$0xff]   ;;  %v2414_v24 = vld [vmem:[#allocation8] sm:$0xff]   ;;  %s3245_s21 = sld [smem:[#allocation23_spill]] }
  0xdb   : > { %v2412_v22 = vld [vmem:[#allocation7 + $0x30] sm:$0xff]   ;;  %v2413_v23 = vld [vmem:[#allocation7 + $0x38] sm:$0xff]   ;;  %v2415_v25 = vld [vmem:[#allocation8 + $0x8] sm:$0xff]  }
  0xdc   : > { %2122 = vmatpush3.bf16.msra.mxu1 %v2407_v8  ;;  %v2416_v26 = vld [vmem:[#allocation8 + $0x10] sm:$0xff]   ;;  %v2417_v27 = vld [vmem:[#allocation8 + $0x18] sm:$0xff]   ;;  %v2418_v28 = vld [vmem:[#allocation8 + $0x20] sm:$0xff]  }
  0xdd   : > { %2092 = vmatpush3.bf16.msra.mxu0 %v2392_v2  ;;  %2123 = vmatprep.subr.bf16.mxu1 %v2408_v10  ;;  %v2419_v29 = vld [vmem:[#allocation8 + $0x28] sm:$0xff]   ;;  %v1922_v30 = vld [vmem:[%s3202_s2] ss:$0 sm:$0xff] }
  0xde   : > { %2093 = vmatprep.subr.bf16.mxu0 %v2393_v3 }
  0xe0   : > { %2124 = vmatpush3.bf16.msra.mxu1 %v2408_v10 }
  0xe1   : > { %2094 = vmatpush3.bf16.msra.mxu0 %v2393_v3  ;;  %2125 = vmatprep.subr.bf16.mxu1 %v2409_v12 }
  0xe2   : > { %2095 = vmatprep.subr.bf16.mxu0 %v2394_v5 }
  0xe4   : > { %2126 = vmatpush3.bf16.msra.mxu1 %v2409_v12 }
  0xe5   : > { %2096 = vmatpush3.bf16.msra.mxu0 %v2394_v5  ;;  %2127 = vmatprep.subr.bf16.mxu1 %v2410_v13 }
  0xe6   : > { %2097 = vmatprep.subr.bf16.mxu0 %v2395_v6 }
  0xe8   : > { %2128 = vmatpush3.bf16.msra.mxu1 %v2410_v13 }
  0xe9   : > { %2098 = vmatpush3.bf16.msra.mxu0 %v2395_v6  ;;  %2129 = vmatprep.subr.bf16.mxu1 %v2411_v16 }
  0xea   : > { %2099 = vmatprep.subr.bf16.mxu0 %v2396_v9 }
  0xec   : > { %2130 = vmatpush3.bf16.msra.mxu1 %v2411_v16 }
  0xed   : > { %2100 = vmatpush3.bf16.msra.mxu0 %v2396_v9  ;;  %2131 = vmatprep.subr.bf16.mxu1 %v2412_v22 }
  0xee   : > { %2101 = vmatprep.subr.bf16.mxu0 %v2397_v11 }
  0xf0   : > { %2132 = vmatpush3.bf16.msra.mxu1 %v2412_v22 }
  0xf1   : > { %2102 = vmatpush3.bf16.msra.mxu0 %v2397_v11  ;;  %2133 = vmatprep.subr.bf16.mxu1 %v2413_v23 }
  0xf2   : > { %2151 = vmatprep.subr.bf16.mxu0 %v2414_v24 }
  0xf4   : > { %2104 = vmatmul.mubr.bf16.vlgmr.msra.gmra.mrb[0].mxu0 %v2399_v14  ;;  %2134 = vmatpush3.bf16.msra.mxu1 %v2413_v23  ;;  %v2420_v23 = vld [vmem:[#allocation8 + $0x30] sm:$0xff]  }
  0xf5   : > { %2107 = vmatprep.mubr.bf16.mxu0 %v2400_v15  ;;  %2152 = vmatpush3.bf16.msra.mxu0 %v2414_v24  ;;  %v2421_v24 = vld [vmem:[#allocation8 + $0x38] sm:$0xff]  }
  0xf6   : > { %2153 = vmatprep.subr.bf16.mxu0 %v2415_v25 }
  0xf9   : > { %2154 = vmatpush3.bf16.msra.mxu0 %v2415_v25  ;;  %v2422_v25 = vld [vmem:[#allocation10] sm:$0xff]  }
  0xfa   : > { %2155 = vmatprep.subr.bf16.mxu0 %v2416_v26  ;;  %2183 = vmatprep.subr.bf16.mxu1 %v2422_v25 }
  0xfc   : > { %2108 = vmatmul.mubr.bf16.gmra.mrb[4].mxu0 %v2401_v17 }
  0xfd   : > { %2111 = vmatprep.mubr.bf16.mxu0 %v2402_v18  ;;  %2156 = vmatpush3.bf16.msra.mxu0 %v2416_v26  ;;  %v2423_v26 = vld [vmem:[#allocation10 + $0x8] sm:$0xff]  }
  0xfe   : > { %2157 = vmatprep.subr.bf16.mxu0 %v2417_v27 }
 0x101   : > { %2158 = vmatpush3.bf16.msra.mxu0 %v2417_v27  ;;  %v2424_v27 = vld [vmem:[#allocation10 + $0x10] sm:$0xff]  }
 0x102   : > { %2159 = vmatprep.subr.bf16.mxu0 %v2418_v28 }
 0x104   : > { %2112 = vmatmul.mubr.bf16.gmra.mrb[8].mxu0 %v2403_v19 }
 0x105   : > { %2115 = vmatprep.mubr.bf16.mxu0 %v2404_v20  ;;  %2160 = vmatpush3.bf16.msra.mxu0 %v2418_v28  ;;  %v2425_v28 = vld [vmem:[#allocation10 + $0x18] sm:$0xff]  }
 0x106   : > { %2161 = vmatprep.subr.bf16.mxu0 %v2419_v29 }
 0x109   : > { %2162 = vmatpush3.bf16.msra.mxu0 %v2419_v29  ;;  %v2426_v29 = vld [vmem:[#allocation10 + $0x20] sm:$0xff]  }
 0x10a   : > { %2163 = vmatprep.subr.bf16.mxu0 %v2420_v23 }
 0x10c   : > { %2116 = vmatmul.mubr.bf16.gmra.mrb[12].mxu0 %v2405_v21 }
 0x10d   : > { %2164 = vmatpush3.bf16.msra.mxu0 %v2420_v23 }
 0x10e   : > { %2165 = vmatprep.subr.bf16.mxu0 %v2421_v24 }
 0x111   : > { %2166 = vmatpush3.bf16.msra.mxu0 %v2421_v24  ;;  %v2428_v24 = vld [vmem:[#allocation10 + $0x30] sm:$0xff]  }
 0x1c7   : > { %v2105_v31 = vpop.f32.mrb[0].mxu0 }
 0x1c8   : > { %v727_v32 = vadd.f32 %v2105_v31, %v1922_v30  ;;  %v718_v33 = vpop.f32.mrb[1].mxu0  ;;  %v1939_v31 = vld [vmem:[%s3204_s4] ss:$0 sm:$0xff] }
 0x1c9   : > { %v719_v34 = vadd.f32 %v1922_v30, %v718_v33  ;;  %v2106_v35 = vpop.f32.mrb[2].mxu0 }
 0x1ca   : > { %v730_v36 = vadd.f32 %v2106_v35, %v1922_v30  ;;  %v721_v37 = vpop.f32.mrb[3].mxu0  ;;  %v783_v39 = vmax.f32 %v727_v32, 0.0 }
 0x1cb   : > { %v722_v38 = vadd.f32 %v1922_v30, %v721_v37  ;;  %v781_v41 = vmax.f32 %v719_v34, 0.0 }
 0x1cc   : > { %v784_v40 = vmax.f32 %v730_v36, 0.0 }
 0x1cd   : > { %v782_v42 = vmax.f32 %v722_v38, 0.0 }
 0x1ce   : > { %v798_v43 = vpack.c.bf16 %v784_v40, %v783_v39 }
 0x1cf   : > { %v2109_v44 = vpop.f32.mrb[4].mxu0  ;;  %v797_v45 = vpack.c.bf16 %v782_v42, %v781_v41 }
 0x1d0   : > { %v743_v46 = vadd.f32 %v2109_v44, %v1922_v30  ;;  %v734_v47 = vpop.f32.mrb[5].mxu0 }
 0x1d1   : > { %v735_v48 = vadd.f32 %v1922_v30, %v734_v47  ;;  %v2110_v49 = vpop.f32.mrb[6].mxu0  ;;  %2135 = vmatprep.mubr.bf16.mxu1 %v797_v45 }
 0x1d2   : > { %v746_v50 = vadd.f32 %v2110_v49, %v1922_v30  ;;  %v737_v51 = vpop.f32.mrb[7].mxu0  ;;  %2136 = vmatmul.mubr.bf16.vlgmr.msra.gmra.mrb[0].mxu1 %v798_v43  ;;  %v787_v53 = vmax.f32 %v743_v46, 0.0 }
 0x1d3   : > { %v738_v52 = vadd.f32 %v1922_v30, %v737_v51  ;;  %v785_v55 = vmax.f32 %v735_v48, 0.0  ;;  %2184 = vmatpush3.bf16.msra.mxu1 %v2422_v25  ;;  %v2429_v25 = vld [vmem:[#allocation10 + $0x38] sm:$0xff]  }
 0x1d4   : > { %v788_v54 = vmax.f32 %v746_v50, 0.0  ;;  %2185 = vmatprep.subr.bf16.mxu1 %v2423_v26 }
 0x1d5   : > { %v786_v56 = vmax.f32 %v738_v52, 0.0 }
 0x1d6   : > { %v800_v57 = vpack.c.bf16 %v788_v54, %v787_v53 }
 0x1d7   : > { %v799_v58 = vpack.c.bf16 %v786_v56, %v785_v55  ;;  %v2113_v59 = vpop.f32.mrb[8].mxu0  ;;  %2186 = vmatpush3.bf16.msra.mxu1 %v2423_v26  ;;  %v2430_v26 = vld [vmem:[#allocation11] sm:$0xff]  }
 0x1d8   : > { %v759_v60 = vadd.f32 %v2113_v59, %v1922_v30  ;;  %v750_v61 = vpop.f32.mrb[9].mxu0  ;;  %2187 = vmatprep.subr.bf16.mxu1 %v2424_v27  ;;  %2215 = vmatprep.subr.bf16.mxu0 %v2430_v26 }
 0x1d9   : > { %v751_v62 = vadd.f32 %v1922_v30, %v750_v61  ;;  %v2114_v63 = vpop.f32.mrb[10].mxu0  ;;  %2139 = vmatprep.mubr.bf16.mxu1 %v799_v58 }
 0x1da   : > { %v762_v0 = vadd.f32 %v2114_v63, %v1922_v30  ;;  %v753_v1 = vpop.f32.mrb[11].mxu0  ;;  %2140 = vmatmul.mubr.bf16.gmra.mrb[4].mxu1 %v800_v57  ;;  %v791_v3 = vmax.f32 %v759_v60, 0.0 }
 0x1db   : > { %v754_v2 = vadd.f32 %v1922_v30, %v753_v1  ;;  %v789_v5 = vmax.f32 %v751_v62, 0.0  ;;  %2188 = vmatpush3.bf16.msra.mxu1 %v2424_v27  ;;  %v2431_v27 = vld [vmem:[#allocation11 + $0x8] sm:$0xff]  }
 0x1dc   : > { %v792_v4 = vmax.f32 %v762_v0, 0.0  ;;  %2189 = vmatprep.subr.bf16.mxu1 %v2425_v28 }
 0x1dd   : > { %v790_v6 = vmax.f32 %v754_v2, 0.0 }
 0x1de   : > { %v802_v7 = vpack.c.bf16 %v792_v4, %v791_v3 }
 0x1df   : > { %v801_v8 = vpack.c.bf16 %v790_v6, %v789_v5  ;;  %v2117_v9 = vpop.f32.mrb[12].mxu0  ;;  %2190 = vmatpush3.bf16.msra.mxu1 %v2425_v28  ;;  %v2432_v28 = vld [vmem:[#allocation11 + $0x10] sm:$0xff]  }
 0x1e0   : > { %v775_v10 = vadd.f32 %v2117_v9, %v1922_v30  ;;  %v766_v11 = vpop.f32.mrb[13].mxu0  ;;  %2191 = vmatprep.subr.bf16.mxu1 %v2426_v29 }
 0x1e1   : > { %v767_v12 = vadd.f32 %v1922_v30, %v766_v11  ;;  %v2118_v13 = vpop.f32.mrb[14].mxu0  ;;  %2143 = vmatprep.mubr.bf16.mxu1 %v801_v8 }
 0x1e2   : > { %v778_v14 = vadd.f32 %v2118_v13, %v1922_v30  ;;  %v769_v15 = vpop.f32.mrb[15].mxu0  ;;  %2144 = vmatmul.mubr.bf16.gmra.mrb[8].mxu1 %v802_v7  ;;  %v795_v17 = vmax.f32 %v775_v10, 0.0 }
 0x1e3   : > { %v770_v16 = vadd.f32 %v1922_v30, %v769_v15  ;;  %v793_v19 = vmax.f32 %v767_v12, 0.0  ;;  %v2427_v30 = vld [vmem:[#allocation10 + $0x28] sm:$0xff]   ;;  %2192 = vmatpush3.bf16.msra.mxu1 %v2426_v29  ;;  %v2433_v29 = vld [vmem:[#allocation11 + $0x18] sm:$0xff]  }
 0x1e4   : > { %v796_v18 = vmax.f32 %v778_v14, 0.0  ;;  %2193 = vmatprep.subr.bf16.mxu1 %v2427_v30 }
 0x1e5   : > { %v794_v20 = vmax.f32 %v770_v16, 0.0 }
 0x1e6   : > { %v804_v21 = vpack.c.bf16 %v796_v18, %v795_v17 }
 0x1e7   : > { %v803_v22 = vpack.c.bf16 %v794_v20, %v793_v19  ;;  %2194 = vmatpush3.bf16.msra.mxu1 %v2427_v30  ;;  %v2434_v30 = vld [vmem:[#allocation11 + $0x20] sm:$0xff]  }
 0x1e8   : > { %2195 = vmatprep.subr.bf16.mxu1 %v2428_v24 }
 0x1e9   : > { %2147 = vmatprep.mubr.bf16.mxu1 %v803_v22 }
 0x1ea   : > { %2148 = vmatmul.mubr.bf16.gmra.mrb[12].mxu1 %v804_v21 }
 0x1eb   : > { %2196 = vmatpush3.bf16.msra.mxu1 %v2428_v24 }
 0x1ec   : > { %2197 = vmatprep.subr.bf16.mxu1 %v2429_v25 }
 0x1ef   : > { %2198 = vmatpush3.bf16.msra.mxu1 %v2429_v25 }
 0x2a5   : > { %v2137_v32 = vpop.f32.mrb[0].mxu1 }
 0x2a6   : > { %v919_v33 = vadd.f32 %v2137_v32, %v1939_v31  ;;  %v910_v34 = vpop.f32.mrb[1].mxu1 }
 0x2a7   : > { %v911_v35 = vadd.f32 %v1939_v31, %v910_v34  ;;  %v2138_v36 = vpop.f32.mrb[2].mxu1 }
 0x2a8   : > { %v922_v37 = vadd.f32 %v2138_v36, %v1939_v31  ;;  %v913_v38 = vpop.f32.mrb[3].mxu1  ;;  %v975_v40 = vmax.f32 %v919_v33, 0.0  ;;  %v1948_v33 = vld [vmem:[%s3243_s1] ss:$0 sm:$0xff]  ;;  %s1771_s1 = sshll.u32 %s3131_s10, 4  ;;  %s3153_s1 = int_to_ptr.vmem [resolvable:$true] %s1771_s1 }
 0x2a9   : > { %v914_v39 = vadd.f32 %v1939_v31, %v913_v38  ;;  %v973_v42 = vmax.f32 %v911_v35, 0.0  ;;  %s2644_s24 = scalar_lea.vmem %s3153_s1, 2048 }
 0x2aa   : > { %v976_v41 = vmax.f32 %v922_v37, 0.0  ;;  %p2645_p6 = scmp.ne.s32.totalorder %s3153_s1, %s2644_s24 }
 0x2ab   : > { %v974_v43 = vmax.f32 %v914_v39, 0.0 }
 0x2ac   : > { %v990_v44 = vpack.c.bf16 %v976_v41, %v975_v40  ;;  %p2646_p12 = pnand %p2645_p6, %p3248_p9 }
 0x2ad   : > { %v989_v45 = vpack.c.bf16 %v974_v43, %v973_v42  ;;  %v2141_v46 = vpop.f32.mrb[4].mxu1 }
 0x2ae   : > { %v935_v47 = vadd.f32 %v2141_v46, %v1939_v31  ;;  %v926_v48 = vpop.f32.mrb[5].mxu1  ;;  %p2647_p1 = pneg %p2646_p12 }
 0x2af   : > { %v927_v49 = vadd.f32 %v1939_v31, %v926_v48  ;;  %v2142_v50 = vpop.f32.mrb[6].mxu1  ;;  %2167 = vmatprep.mubr.bf16.mxu0 %v989_v45 }
 0x2b0   : > { %v938_v51 = vadd.f32 %v2142_v50, %v1939_v31  ;;  %v929_v52 = vpop.f32.mrb[7].mxu1  ;;  %2168 = vmatmul.mubr.bf16.vlgmr.msra.gmra.mrb[16].mxu0 %v990_v44  ;;  %v979_v54 = vmax.f32 %v935_v47, 0.0 }
 0x2b1   : > { %v930_v53 = vadd.f32 %v1939_v31, %v929_v52  ;;  %v977_v56 = vmax.f32 %v927_v49, 0.0  ;;  %2216 = vmatpush3.bf16.msra.mxu0 %v2430_v26 }
 0x2b2   : > { %v980_v55 = vmax.f32 %v938_v51, 0.0  ;;  %2217 = vmatprep.subr.bf16.mxu0 %v2431_v27 }
 0x2b3   : > { %v978_v57 = vmax.f32 %v930_v53, 0.0 }
 0x2b4   : > { %v992_v58 = vpack.c.bf16 %v980_v55, %v979_v54 }
 0x2b5   : > { %v991_v59 = vpack.c.bf16 %v978_v57, %v977_v56  ;;  %v2145_v60 = vpop.f32.mrb[8].mxu1  ;;  %2218 = vmatpush3.bf16.msra.mxu0 %v2431_v27 }
 0x2b6   : > { %v951_v61 = vadd.f32 %v2145_v60, %v1939_v31  ;;  %v942_v62 = vpop.f32.mrb[9].mxu1  ;;  %2219 = vmatprep.subr.bf16.mxu0 %v2432_v28 }
 0x2b7   : > { %v943_v63 = vadd.f32 %v1939_v31, %v942_v62  ;;  %v2146_v0 = vpop.f32.mrb[10].mxu1  ;;  %2171 = vmatprep.mubr.bf16.mxu0 %v991_v59 }
 0x2b8   : > { %v954_v1 = vadd.f32 %v2146_v0, %v1939_v31  ;;  %v945_v2 = vpop.f32.mrb[11].mxu1  ;;  %2172 = vmatmul.mubr.bf16.gmra.mrb[20].mxu0 %v992_v58  ;;  %v983_v4 = vmax.f32 %v951_v61, 0.0 }
 0x2b9   : > { %v946_v3 = vadd.f32 %v1939_v31, %v945_v2  ;;  %v981_v6 = vmax.f32 %v943_v63, 0.0  ;;  %2220 = vmatpush3.bf16.msra.mxu0 %v2432_v28 }
 0x2ba   : > { %v984_v5 = vmax.f32 %v954_v1, 0.0  ;;  %2221 = vmatprep.subr.bf16.mxu0 %v2433_v29 }
 0x2bb   : > { %v982_v7 = vmax.f32 %v946_v3, 0.0 }
 0x2bc   : > { %v994_v8 = vpack.c.bf16 %v984_v5, %v983_v4 }
 0x2bd   : > { %v993_v9 = vpack.c.bf16 %v982_v7, %v981_v6  ;;  %v2149_v10 = vpop.f32.mrb[12].mxu1  ;;  %2222 = vmatpush3.bf16.msra.mxu0 %v2433_v29 }
 0x2be   : > { %v967_v11 = vadd.f32 %v2149_v10, %v1939_v31  ;;  %v958_v12 = vpop.f32.mrb[13].mxu1  ;;  %2223 = vmatprep.subr.bf16.mxu0 %v2434_v30  ;;  %v2437_v10 = vld [vmem:[#allocation11 + $0x38] sm:$0xff]  }
 0x2bf   : > { %v959_v13 = vadd.f32 %v1939_v31, %v958_v12  ;;  %v2150_v14 = vpop.f32.mrb[14].mxu1  ;;  %2175 = vmatprep.mubr.bf16.mxu0 %v993_v9  ;;  %v2436_v9 = vld [vmem:[#allocation11 + $0x30] sm:$0xff]   ;;  %v2439_v12 = vld [vmem:[#allocation13 + $0x8] sm:$0xff]  }
 0x2c0   : > { %v970_v15 = vadd.f32 %v2150_v14, %v1939_v31  ;;  %v961_v16 = vpop.f32.mrb[15].mxu1  ;;  %2176 = vmatmul.mubr.bf16.gmra.mrb[24].mxu0 %v994_v8  ;;  %v987_v18 = vmax.f32 %v967_v11, 0.0  ;;  %v2438_v11 = vld [vmem:[#allocation13] sm:$0xff]   ;;  %v2441_v14 = vld [vmem:[#allocation13 + $0x18] sm:$0xff]  }
 0x2c1   : > { %v962_v17 = vadd.f32 %v1939_v31, %v961_v16  ;;  %v985_v20 = vmax.f32 %v959_v13, 0.0  ;;  %v2435_v31 = vld [vmem:[#allocation11 + $0x28] sm:$0xff]   ;;  %2224 = vmatpush3.bf16.msra.mxu0 %v2434_v30  ;;  %2247 = vmatprep.subr.bf16.mxu1 %v2438_v11  ;;  %v2440_v13 = vld [vmem:[#allocation13 + $0x10] sm:$0xff]  }
 0x2c2   : > { %v988_v19 = vmax.f32 %v970_v15, 0.0  ;;  %2225 = vmatprep.subr.bf16.mxu0 %v2435_v31  ;;  %v2442_v15 = vld [vmem:[#allocation13 + $0x20] sm:$0xff]   ;;  %v2443_v16 = vld [vmem:[#allocation13 + $0x28] sm:$0xff]  }
 0x2c3   : > { %v986_v21 = vmax.f32 %v962_v17, 0.0  ;;  %v1957_v17 = vld [vmem:[%s3244_s23] ss:$0 sm:$0xff]  ;;  %s3247_s23 = sld [smem:[#allocation25_spill]] }
 0x2c4   : > { %v996_v22 = vpack.c.bf16 %v988_v19, %v987_v18 }
 0x2c5   : > { %v995_v23 = vpack.c.bf16 %v986_v21, %v985_v20  ;;  %2226 = vmatpush3.bf16.msra.mxu0 %v2435_v31 }
 0x2c6   : > { %2227 = vmatprep.subr.bf16.mxu0 %v2436_v9 }
 0x2c7   : > { %2179 = vmatprep.mubr.bf16.mxu0 %v995_v23 }
 0x2c8   : > { %2180 = vmatmul.mubr.bf16.gmra.mrb[28].mxu0 %v996_v22 }
 0x2c9   : > { %2228 = vmatpush3.bf16.msra.mxu0 %v2436_v9  ;;  %s3151_s18 = scalar_lea.hbm %s3247_s23, %s1990_s20 }
 0x2ca   : > { %2229 = vmatprep.subr.bf16.mxu0 %v2437_v10 }
 0x2cd   : > { %2230 = vmatpush3.bf16.msra.mxu0 %v2437_v10  ;;  %v2444_v10 = vld [vmem:[#allocation13 + $0x30] sm:$0xff]  }
 0x383   : > { %v2169_v32 = vpop.f32.mrb[16].mxu0 }
 0x384   : > { %v1102_v34 = vpop.f32.mrb[17].mxu0  ;;  %v1111_v36 = vadd.f32 %v2169_v32, %v1948_v33 }
 0x385   : > { %v2170_v35 = vpop.f32.mrb[18].mxu0  ;;  %v1103_v39 = vadd.f32 %v1948_v33, %v1102_v34 }
 0x386   : > { %v1114_v37 = vadd.f32 %v2170_v35, %v1948_v33  ;;  %v1105_v38 = vpop.f32.mrb[19].mxu0 }
 0x387   : > { %v1106_v40 = vadd.f32 %v1948_v33, %v1105_v38 }
 0x388   : > { %v1166_v41 = vpack.c.bf16 %v1114_v37, %v1111_v36 }
 0x389   : > { %v1165_v42 = vpack.c.bf16 %v1106_v40, %v1103_v39 }
 0x38b   : > { %v2173_v43 = vpop.f32.mrb[20].mxu0  ;;  %2199 = vmatprep.mubr.bf16.mxu1 %v1165_v42 }
 0x38c   : > { %v1118_v44 = vpop.f32.mrb[21].mxu0  ;;  %2200 = vmatmul.mubr.bf16.vlgmr.msra.gmra.mrb[16].mxu1 %v1166_v41  ;;  %v1127_v46 = vadd.f32 %v2173_v43, %v1948_v33 }
 0x38d   : > { %v2174_v45 = vpop.f32.mrb[22].mxu0  ;;  %v1119_v49 = vadd.f32 %v1948_v33, %v1118_v44  ;;  %2248 = vmatpush3.bf16.msra.mxu1 %v2438_v11  ;;  %v2445_v11 = vld [vmem:[#allocation13 + $0x38] sm:$0xff]  }
 0x38e   : > { %v1130_v47 = vadd.f32 %v2174_v45, %v1948_v33  ;;  %v1121_v48 = vpop.f32.mrb[23].mxu0  ;;  %2249 = vmatprep.subr.bf16.mxu1 %v2439_v12 }
 0x38f   : > { %v1122_v50 = vadd.f32 %v1948_v33, %v1121_v48 }
 0x390   : > { %v1168_v51 = vpack.c.bf16 %v1130_v47, %v1127_v46 }
 0x391   : > { %v1167_v52 = vpack.c.bf16 %v1122_v50, %v1119_v49  ;;  %2250 = vmatpush3.bf16.msra.mxu1 %v2439_v12  ;;  %v1966_v12 = vld [vmem:[%s3245_s21] ss:$0 sm:$0xff]  ;;  %s2733_s21 = smov [#allocation14]  }
 0x392   : > { %2251 = vmatprep.subr.bf16.mxu1 %v2440_v13  ;;  %s2648_s15 = sshll.u32 %s2733_s21, 4  ;;  %s2649_s15 = int_to_ptr.vmem [resolvable:$false] %s2648_s15 }
 0x393   : > { %v2177_v53 = vpop.f32.mrb[24].mxu0  ;;  %2203 = vmatprep.mubr.bf16.mxu1 %v1167_v52  ;;  %s2650_s22 = scalar_lea.vmem %s2649_s15, 4096  ;;  %p2651_p13 = scmp.lt.s32.totalorder %s3153_s1, %s2649_s15 }
 0x394   : > { %v1134_v54 = vpop.f32.mrb[25].mxu0  ;;  %2204 = vmatmul.mubr.bf16.gmra.mrb[20].mxu1 %v1168_v51  ;;  %v1143_v56 = vadd.f32 %v2177_v53, %v1948_v33  ;;  %p2652_p0 = scmp.lt.s32.totalorder %s2650_s22, %s2644_s24 }
 0x395   : > { %v2178_v55 = vpop.f32.mrb[26].mxu0  ;;  %v1135_v59 = vadd.f32 %v1948_v33, %v1134_v54  ;;  %2252 = vmatpush3.bf16.msra.mxu1 %v2440_v13 }
 0x396   : > { %v1146_v57 = vadd.f32 %v2178_v55, %v1948_v33  ;;  %v1137_v58 = vpop.f32.mrb[27].mxu0  ;;  %2253 = vmatprep.subr.bf16.mxu1 %v2441_v14  ;;  %p2653_p2 = por %p2652_p0, %p2651_p13 }
 0x397   : > { %v1138_v60 = vadd.f32 %v1948_v33, %v1137_v58 }
 0x398   : > { %v1170_v61 = vpack.c.bf16 %v1146_v57, %v1143_v56  ;;  %p2654_p8 = pnand %p2653_p2, %p2647_p1 }
 0x399   : > { %v1169_v62 = vpack.c.bf16 %v1138_v60, %v1135_v59  ;;  %2254 = vmatpush3.bf16.msra.mxu1 %v2441_v14 }
 0x39a   : > { %2255 = vmatprep.subr.bf16.mxu1 %v2442_v15 }
 0x39b   : > { %v2181_v63 = vpop.f32.mrb[28].mxu0  ;;  %2207 = vmatprep.mubr.bf16.mxu1 %v1169_v62 }
 0x39c   : > { %v1150_v0 = vpop.f32.mrb[29].mxu0  ;;  %2208 = vmatmul.mubr.bf16.gmra.mrb[24].mxu1 %v1170_v61  ;;  %v1159_v2 = vadd.f32 %v2181_v63, %v1948_v33 }
 0x39d   : > { %v2182_v1 = vpop.f32.mrb[30].mxu0  ;;  %v1151_v5 = vadd.f32 %v1948_v33, %v1150_v0  ;;  %2256 = vmatpush3.bf16.msra.mxu1 %v2442_v15 }
 0x39e   : > { %v1162_v3 = vadd.f32 %v2182_v1, %v1948_v33  ;;  %v1153_v4 = vpop.f32.mrb[31].mxu0  ;;  %2257 = vmatprep.subr.bf16.mxu1 %v2443_v16 }
 0x39f   : > { %v1154_v6 = vadd.f32 %v1948_v33, %v1153_v4 }
 0x3a0   : > { %v1172_v7 = vpack.c.bf16 %v1162_v3, %v1159_v2 }
 0x3a1   : > { %v1171_v8 = vpack.c.bf16 %v1154_v6, %v1151_v5  ;;  %2258 = vmatpush3.bf16.msra.mxu1 %v2443_v16 }
 0x3a2   : > { %2259 = vmatprep.subr.bf16.mxu1 %v2444_v10 }
 0x3a3   : > { %2211 = vmatprep.mubr.bf16.mxu1 %v1171_v8 }
 0x3a4   : > { %2212 = vmatmul.mubr.bf16.gmra.mrb[28].mxu1 %v1172_v7 }
 0x3a5   : > { %2260 = vmatpush3.bf16.msra.mxu1 %v2444_v10 }
 0x3a6   : > { %2261 = vmatprep.subr.bf16.mxu1 %v2445_v11 }
 0x3a9   : > { %2262 = vmatpush3.bf16.msra.mxu1 %v2445_v11 }
 0x45f   : > { %v2201_v18 = vpop.f32.mrb[16].mxu1 }
 0x460   : > { %v1287_v19 = vadd.f32 %v2201_v18, %v1957_v17  ;;  %v1278_v20 = vpop.f32.mrb[17].mxu1 }
 0x461   : > { %v1279_v21 = vadd.f32 %v1957_v17, %v1278_v20  ;;  %v2202_v22 = vpop.f32.mrb[18].mxu1 }
 0x462   : > { %v1290_v23 = vadd.f32 %v2202_v22, %v1957_v17  ;;  %v1281_v24 = vpop.f32.mrb[19].mxu1  ;;  %v1343_v26 = vmax.f32 %v1287_v19, 0.0 }
 0x463   : > { %v1282_v25 = vadd.f32 %v1957_v17, %v1281_v24  ;;  %v1341_v28 = vmax.f32 %v1279_v21, 0.0 }
 0x464   : > { %v1344_v27 = vmax.f32 %v1290_v23, 0.0 }
 0x465   : > { %v1342_v29 = vmax.f32 %v1282_v25, 0.0 }
 0x466   : > { %v1358_v30 = vpack.c.bf16 %v1344_v27, %v1343_v26 }
 0x467   : > { %v1357_v31 = vpack.c.bf16 %v1342_v29, %v1341_v28  ;;  %v2205_v32 = vpop.f32.mrb[20].mxu1 }
 0x468   : > { %v1303_v33 = vadd.f32 %v2205_v32, %v1957_v17  ;;  %v1294_v34 = vpop.f32.mrb[21].mxu1 }
 0x469   : > { %v1295_v35 = vadd.f32 %v1957_v17, %v1294_v34  ;;  %v2206_v36 = vpop.f32.mrb[22].mxu1  ;;  %2231 = vmatprep.mubr.bf16.mxu0 %v1357_v31 }
 0x46a   : > { %v1306_v37 = vadd.f32 %v2206_v36, %v1957_v17  ;;  %v1297_v38 = vpop.f32.mrb[23].mxu1  ;;  %2232 = vmatmul.mubr.bf16.vlgmr.msra.gmra.mrb[32].mxu0 %v1358_v30  ;;  %v1347_v40 = vmax.f32 %v1303_v33, 0.0 }
 0x46b   : > { %v1298_v39 = vadd.f32 %v1957_v17, %v1297_v38  ;;  %v1345_v42 = vmax.f32 %v1295_v35, 0.0 }
 0x46c   : > { %v1348_v41 = vmax.f32 %v1306_v37, 0.0 }
 0x46d   : > { %v1346_v43 = vmax.f32 %v1298_v39, 0.0 }
 0x46e   : > { %v1360_v44 = vpack.c.bf16 %v1348_v41, %v1347_v40 }
 0x46f   : > { %v1359_v45 = vpack.c.bf16 %v1346_v43, %v1345_v42  ;;  %v2209_v46 = vpop.f32.mrb[24].mxu1 }
 0x470   : > { %v1319_v47 = vadd.f32 %v2209_v46, %v1957_v17  ;;  %v1310_v48 = vpop.f32.mrb[25].mxu1 }
 0x471   : > { %v1311_v49 = vadd.f32 %v1957_v17, %v1310_v48  ;;  %v2210_v50 = vpop.f32.mrb[26].mxu1  ;;  %2235 = vmatprep.mubr.bf16.mxu0 %v1359_v45 }
 0x472   : > { %v1322_v51 = vadd.f32 %v2210_v50, %v1957_v17  ;;  %v1313_v52 = vpop.f32.mrb[27].mxu1  ;;  %2236 = vmatmul.mubr.bf16.gmra.mrb[36].mxu0 %v1360_v44  ;;  %v1351_v54 = vmax.f32 %v1319_v47, 0.0 }
 0x473   : > { %v1314_v53 = vadd.f32 %v1957_v17, %v1313_v52  ;;  %v1349_v56 = vmax.f32 %v1311_v49, 0.0 }
 0x474   : > { %v1352_v55 = vmax.f32 %v1322_v51, 0.0 }
 0x475   : > { %v1350_v57 = vmax.f32 %v1314_v53, 0.0 }
 0x476   : > { %v1362_v58 = vpack.c.bf16 %v1352_v55, %v1351_v54 }
 0x477   : > { %v1361_v59 = vpack.c.bf16 %v1350_v57, %v1349_v56  ;;  %v2213_v60 = vpop.f32.mrb[28].mxu1 }
 0x478   : > { %v1335_v61 = vadd.f32 %v2213_v60, %v1957_v17  ;;  %v1326_v62 = vpop.f32.mrb[29].mxu1 }
 0x479   : > { %v1327_v63 = vadd.f32 %v1957_v17, %v1326_v62  ;;  %v2214_v0 = vpop.f32.mrb[30].mxu1  ;;  %2239 = vmatprep.mubr.bf16.mxu0 %v1361_v59 }
 0x47a   : > { %v1338_v1 = vadd.f32 %v2214_v0, %v1957_v17  ;;  %v1329_v2 = vpop.f32.mrb[31].mxu1  ;;  %2240 = vmatmul.mubr.bf16.gmra.mrb[40].mxu0 %v1362_v58  ;;  %v1355_v4 = vmax.f32 %v1335_v61, 0.0 }
 0x47b   : > { %v1330_v3 = vadd.f32 %v1957_v17, %v1329_v2  ;;  %v1353_v6 = vmax.f32 %v1327_v63, 0.0 }
 0x47c   : > { %v1356_v5 = vmax.f32 %v1338_v1, 0.0 }
 0x47d   : > { %v1354_v7 = vmax.f32 %v1330_v3, 0.0 }
 0x47e   : > { %v1364_v8 = vpack.c.bf16 %v1356_v5, %v1355_v4  ;;  %v1975_v5 = vld [vmem:[%s3246_s13] ss:$0 sm:$0xff] }
 0x47f   : > { %v1363_v9 = vpack.c.bf16 %v1354_v7, %v1353_v6 }
 0x481   : > { %2243 = vmatprep.mubr.bf16.mxu0 %v1363_v9 }
 0x482   : > { %2244 = vmatmul.mubr.bf16.gmra.mrb[44].mxu0 %v1364_v8 }
 0x53d   : > { %v2233_v13 = vpop.f32.mrb[32].mxu0 }
 0x53e   : > { %v1479_v14 = vadd.f32 %v2233_v13, %v1966_v12  ;;  %v1470_v15 = vpop.f32.mrb[33].mxu0 }
 0x53f   : > { %v1471_v16 = vadd.f32 %v1966_v12, %v1470_v15  ;;  %v2234_v17 = vpop.f32.mrb[34].mxu0 }
 0x540   : > { %v1482_v18 = vadd.f32 %v2234_v17, %v1966_v12  ;;  %v1473_v19 = vpop.f32.mrb[35].mxu0  ;;  %v1535_v21 = vmax.f32 %v1479_v14, 0.0 }
 0x541   : > { %v1474_v20 = vadd.f32 %v1966_v12, %v1473_v19  ;;  %v1533_v23 = vmax.f32 %v1471_v16, 0.0 }
 0x542   : > { %v1536_v22 = vmax.f32 %v1482_v18, 0.0 }
 0x543   : > { %v1534_v24 = vmax.f32 %v1474_v20, 0.0 }
 0x544   : > { %v1550_v25 = vpack.c.bf16 %v1536_v22, %v1535_v21 }
 0x545   : > { %v1549_v26 = vpack.c.bf16 %v1534_v24, %v1533_v23  ;;  %v2237_v27 = vpop.f32.mrb[36].mxu0 }
 0x546   : > { %v1495_v28 = vadd.f32 %v2237_v27, %v1966_v12  ;;  %v1486_v29 = vpop.f32.mrb[37].mxu0 }
 0x547   : > { %v1487_v30 = vadd.f32 %v1966_v12, %v1486_v29  ;;  %v2238_v31 = vpop.f32.mrb[38].mxu0  ;;  %2263 = vmatprep.mubr.bf16.mxu1 %v1549_v26 }
 0x548   : > { %v1498_v32 = vadd.f32 %v2238_v31, %v1966_v12  ;;  %v1489_v33 = vpop.f32.mrb[39].mxu0  ;;  %2264 = vmatmul.mubr.bf16.vlgmr.msra.gmra.mrb[32].mxu1 %v1550_v25  ;;  %v1539_v35 = vmax.f32 %v1495_v28, 0.0 }
 0x549   : > { %v1490_v34 = vadd.f32 %v1966_v12, %v1489_v33  ;;  %v1537_v37 = vmax.f32 %v1487_v30, 0.0 }
 0x54a   : > { %v1540_v36 = vmax.f32 %v1498_v32, 0.0 }
 0x54b   : > { %v1538_v38 = vmax.f32 %v1490_v34, 0.0 }
 0x54c   : > { %v1552_v39 = vpack.c.bf16 %v1540_v36, %v1539_v35 }
 0x54d   : > { %v1551_v40 = vpack.c.bf16 %v1538_v38, %v1537_v37  ;;  %v2241_v41 = vpop.f32.mrb[40].mxu0 }
 0x54e   : > { %v1511_v42 = vadd.f32 %v2241_v41, %v1966_v12  ;;  %v1502_v43 = vpop.f32.mrb[41].mxu0 }
 0x54f   : > { %v1503_v44 = vadd.f32 %v1966_v12, %v1502_v43  ;;  %v2242_v45 = vpop.f32.mrb[42].mxu0  ;;  %2267 = vmatprep.mubr.bf16.mxu1 %v1551_v40 }
 0x550   : > { %v1514_v46 = vadd.f32 %v2242_v45, %v1966_v12  ;;  %v1505_v47 = vpop.f32.mrb[43].mxu0  ;;  %2268 = vmatmul.mubr.bf16.gmra.mrb[36].mxu1 %v1552_v39  ;;  %v1543_v49 = vmax.f32 %v1511_v42, 0.0 }
 0x551   : > { %v1506_v48 = vadd.f32 %v1966_v12, %v1505_v47  ;;  %v1541_v51 = vmax.f32 %v1503_v44, 0.0 }
 0x552   : > { %v1544_v50 = vmax.f32 %v1514_v46, 0.0 }
 0x553   : > { %v1542_v52 = vmax.f32 %v1506_v48, 0.0 }
 0x554   : > { %v1554_v53 = vpack.c.bf16 %v1544_v50, %v1543_v49 }
 0x555   : > { %v1553_v54 = vpack.c.bf16 %v1542_v52, %v1541_v51  ;;  %v2245_v55 = vpop.f32.mrb[44].mxu0 }
 0x556   : > { %v1527_v56 = vadd.f32 %v2245_v55, %v1966_v12  ;;  %v1518_v57 = vpop.f32.mrb[45].mxu0 }
 0x557   : > { %v1519_v58 = vadd.f32 %v1966_v12, %v1518_v57  ;;  %v2246_v59 = vpop.f32.mrb[46].mxu0  ;;  %2271 = vmatprep.mubr.bf16.mxu1 %v1553_v54 }
 0x558   : > { %v1530_v60 = vadd.f32 %v2246_v59, %v1966_v12  ;;  %v1521_v61 = vpop.f32.mrb[47].mxu0  ;;  %2272 = vmatmul.mubr.bf16.gmra.mrb[40].mxu1 %v1554_v53  ;;  %v1547_v63 = vmax.f32 %v1527_v56, 0.0 }
 0x559   : > { %v1522_v62 = vadd.f32 %v1966_v12, %v1521_v61  ;;  %v1545_v1 = vmax.f32 %v1519_v58, 0.0 }
 0x55a   : > { %v1548_v0 = vmax.f32 %v1530_v60, 0.0 }
 0x55b   : > { %v1546_v2 = vmax.f32 %v1522_v62, 0.0 }
 0x55c   : > { %v1556_v3 = vpack.c.bf16 %v1548_v0, %v1547_v63 }
 0x55d   : > { %v1555_v4 = vpack.c.bf16 %v1546_v2, %v1545_v1 }
 0x55f   : > { %2275 = vmatprep.mubr.bf16.mxu1 %v1555_v4 }
 0x560   : > { %2276 = vmatmul.mubr.bf16.gmra.mrb[44].mxu1 %v1556_v3 }
 0x61b   : > { %v2265_v6 = vpop.f32.mrb[32].mxu1 }
 0x61c   : > { %v1671_v7 = vadd.f32 %v2265_v6, %v1975_v5  ;;  %v1662_v8 = vpop.f32.mrb[33].mxu1 }
 0x61d   : > { %v1663_v9 = vadd.f32 %v1975_v5, %v1662_v8  ;;  %v2266_v10 = vpop.f32.mrb[34].mxu1 }
 0x61e   : > { %v1727_v11 = vmax.f32 %v1671_v7, 0.0  ;;  %v1674_v12 = vadd.f32 %v2266_v10, %v1975_v5  ;;  %v1665_v13 = vpop.f32.mrb[35].mxu1 }
 0x61f   : > { %v1725_v14 = vmax.f32 %v1663_v9, 0.0  ;;  %v1666_v15 = vadd.f32 %v1975_v5, %v1665_v13 }
 0x620   : > { %1743 = vst [vmem:[%s3131_s10 + $0x10] sm:$0xff] %v1727_v11  ;;  %v1728_v16 = vmax.f32 %v1674_v12, 0.0 }
 0x621   : > { %1741 = vst [vmem:[%s3131_s10] sm:$0xff] %v1725_v14  ;;  %v1726_v17 = vmax.f32 %v1666_v15, 0.0 }
 0x622   : > { %1744 = vst [vmem:[%s3131_s10 + $0x18] sm:$0xff] %v1728_v16 }
 0x623   : > { %1742 = vst [vmem:[%s3131_s10 + $0x8] sm:$0xff] %v1726_v17  ;;  %v2269_v18 = vpop.f32.mrb[36].mxu1 }
 0x624   : > { %v1687_v19 = vadd.f32 %v2269_v18, %v1975_v5  ;;  %v1678_v20 = vpop.f32.mrb[37].mxu1 }
 0x625   : > { %v1679_v21 = vadd.f32 %v1975_v5, %v1678_v20  ;;  %v2270_v22 = vpop.f32.mrb[38].mxu1 }
 0x626   : > { %v1731_v23 = vmax.f32 %v1687_v19, 0.0  ;;  %v1690_v24 = vadd.f32 %v2270_v22, %v1975_v5  ;;  %v1681_v25 = vpop.f32.mrb[39].mxu1 }
 0x627   : > { %v1729_v26 = vmax.f32 %v1679_v21, 0.0  ;;  %v1682_v27 = vadd.f32 %v1975_v5, %v1681_v25 }
 0x628   : > { %1747 = vst [vmem:[%s3131_s10 + $0x30] sm:$0xff] %v1731_v23  ;;  %v1732_v28 = vmax.f32 %v1690_v24, 0.0 }
 0x629   : > { %1745 = vst [vmem:[%s3131_s10 + $0x20] sm:$0xff] %v1729_v26  ;;  %v1730_v29 = vmax.f32 %v1682_v27, 0.0 }
 0x62a   : > { %1748 = vst [vmem:[%s3131_s10 + $0x38] sm:$0xff] %v1732_v28 }
 0x62b   : > { %1746 = vst [vmem:[%s3131_s10 + $0x28] sm:$0xff] %v1730_v29  ;;  %v2273_v30 = vpop.f32.mrb[40].mxu1 }
 0x62c   : > { %v1703_v31 = vadd.f32 %v2273_v30, %v1975_v5  ;;  %v1694_v32 = vpop.f32.mrb[41].mxu1 }
 0x62d   : > { %v1695_v33 = vadd.f32 %v1975_v5, %v1694_v32  ;;  %v2274_v34 = vpop.f32.mrb[42].mxu1 }
 0x62e   : > { %v1735_v35 = vmax.f32 %v1703_v31, 0.0  ;;  %v1706_v36 = vadd.f32 %v2274_v34, %v1975_v5  ;;  %v1697_v37 = vpop.f32.mrb[43].mxu1 }
 0x62f   : > { %v1733_v38 = vmax.f32 %v1695_v33, 0.0  ;;  %v1698_v39 = vadd.f32 %v1975_v5, %v1697_v37 }
 0x630   : > { %1751 = vst [vmem:[%s3131_s10 + $0x50] sm:$0xff] %v1735_v35  ;;  %v1736_v40 = vmax.f32 %v1706_v36, 0.0 }
 0x631   : > { %1749 = vst [vmem:[%s3131_s10 + $0x40] sm:$0xff] %v1733_v38  ;;  %v1734_v41 = vmax.f32 %v1698_v39, 0.0 }
 0x632   : > { %1752 = vst [vmem:[%s3131_s10 + $0x58] sm:$0xff] %v1736_v40 }
 0x633   : > { %1750 = vst [vmem:[%s3131_s10 + $0x48] sm:$0xff] %v1734_v41  ;;  %v2277_v42 = vpop.f32.mrb[44].mxu1 }
 0x634   : > { %v1719_v43 = vadd.f32 %v2277_v42, %v1975_v5  ;;  %v1710_v44 = vpop.f32.mrb[45].mxu1 }
 0x635   : > { %v1711_v45 = vadd.f32 %v1975_v5, %v1710_v44  ;;  %v2278_v46 = vpop.f32.mrb[46].mxu1 }
 0x636   : > { %v1739_v47 = vmax.f32 %v1719_v43, 0.0  ;;  %v1722_v48 = vadd.f32 %v2278_v46, %v1975_v5  ;;  %v1713_v49 = vpop.f32.mrb[47].mxu1 }
 0x637   : > { %v1737_v50 = vmax.f32 %v1711_v45, 0.0  ;;  %v1714_v51 = vadd.f32 %v1975_v5, %v1713_v49 }
 0x638   : > { %1755 = vst [vmem:[%s3131_s10 + $0x70] sm:$0xff] %v1739_v47  ;;  %v1740_v52 = vmax.f32 %v1722_v48, 0.0 }
 0x639   : > { %1753 = vst [vmem:[%s3131_s10 + $0x60] sm:$0xff] %v1737_v50  ;;  %v1738_v53 = vmax.f32 %v1714_v51, 0.0 }
 0x63a   : > { %1756 = vst [vmem:[%s3131_s10 + $0x78] sm:$0xff] %v1740_v52 }
 0x63b   : > { %1754 = vst [vmem:[%s3131_s10 + $0x68] sm:$0xff] %v1738_v53 }
 0x63c   : > { %2657 = shalt.err (!%p2654_p8)
}
 0x63d   : > { %s2658_s13 = scalar_lea.hbm %s3151_s18, 2048  ;;  %s2662_s20 = scalar_lea.hbm %s3247_s23, 4096 }
 0x63e   : > { %p2659_p4 = scmp.ne.s32.totalorder %s3151_s18, %s2658_s13  ;;  %p2663_p3 = scmp.lt.u32.totalorder %s3151_s18, %s3247_s23 }
 0x63f   : > { %p2664_p5 = scmp.lt.u32.totalorder %s2662_s20, %s2658_s13  ;;  %p2666_p6 = scmp.lt.u32.totalorder %s2658_s13, %s3151_s18 }
 0x640   : > { %p2660_p10 = pnand %p2659_p4, %p3248_p9 }
 0x641   : > { %p2665_p7 = por %p2664_p5, %p2663_p3 }
 0x642   : > { %p2661_p11 = pneg %p2660_p10 }
 0x643   : > { %p2667_p12 = por %p2666_p6, %p2665_p7 }
 0x645   : > { %p2668_p1 = pnand %p2667_p12, %p2661_p11 }
 0x647   : > { %2671 = shalt.err (!%p2668_p1)
}
 0x648   : > { %s2734_s24 = smov 128   ;;  %s2735_s21 = smov 8  }
 0x649   : > { %2305 = dma.vmem_to_hbm [thread:$0]  (%p3248_p9), %s3153_s1, 2048, %s3151_s18, %s1758_s14, %s2734_s24, %s2734_s24, %s2735_s21  }
 0x64a PF: > { %s1786_s15 = sand.u32 1, %s2710_s25   ;;  %p3249_p13 = scmp.ne.s32.totalorder %s3233_s19, 0 }
 0x64b   : > { %p3250_p0 = scmp.ge.s32.totalorder %s2722_s28, 2  ;;  %s1787_s22 = scalar_lea.sflag [#allocation4], %s1786_s15 }
 0x64d   : > { %p2331_p2 = pnand %p3250_p0, %p3249_p13 }
 0x64f   : > { %2705 = dma.done.wait (!%p2331_p2), %s1787_s22, 2048  }
 0x650   : > { %2707 = vsyncadd (!%p2331_p2), %s1787_s22, 4294965248  ;;  %p29_p8 = scmp.ge.s32.totalorder %s3000_s16, 4   ;;  %s3251_s25 = smov %s2714_s26 }
 0x651   : > { %s3252_s26 = smov %s2718_s27  ;;  %s3253_s27 = smov %s3011_s8 }
 0x652   : > { %s3254_s28 = smov %s3000_s16  ;;  %31 = sbr.rel (!%p29_p8) target bundleno = 15 (0xf), region = 141 }
 0x659   :  { %1792 = vsyncpa [#allocation3], 1 }
 0x65a   :  { %1794 = vsyncpa [#allocation3 + $0x1], 1 }
 0x65b   :  { %1795 = vsyncpa [#allocation6], 1 }
 0x65c   :  { %1796 = vsyncpa [#allocation9], 1 }
 0x65d   :  { %1797 = vsyncpa [#allocation12], 1 }
 0x65e   :  { %1798 = vsyncpa [#allocation4], 1 }
 0x65f   :  { %1800 = vsyncpa [#allocation4 + $0x1], 1 }

</bundles_post_ra>
